<compile_context>
chip_gen: v7x
topology: tpu7x:2x2x1
jax: 0.10.0
libtpu: 0.0.40
codegen_flags: <defaults>
</compile_context>

<pallas_src>
import math

import jax
import jax.numpy as jnp
from jax.experimental import pallas as pl
from jax.experimental.pallas import tpu as pltpu


def _motion_encoder_kernel(x_ref, h0_ref, w_lin_ref, b_lin_ref,
                           w_ih_ref, w_hh_ref, b_g_ref, b_hn_ref,
                           hN_ref, seq_ref):
    # x_ref:   [S*B, I]   time-major flattened inputs (rows t*B .. t*B+B-1 = step t)
    # h0_ref:  [L, B, H]  initial hidden state
    # w_lin:   [I, H], b_lin: [1, H]
    # w_ih/w_hh: [L, H, 3H]  per-layer GRU weights, gates (r|z|n) concatenated on lanes
    # b_g:     [L, 1, 3H]  input-side gate bias (b_hh folded in for the r,z gates)
    # b_hn:    [L, 1, H]   hidden-side bias of the n gate (kept separate: scaled by r)
    # hN_ref:  [L, B, H]   final hidden state (output)
    # seq_ref: [S*B, H]    VMEM scratch: current layer's input sequence
    SB, _ = x_ref.shape
    L, B, H = h0_ref.shape
    S = SB // B
    f32 = jnp.float32

    # Linear + ReLU for every time step in a single MXU matmul.
    seq_ref[...] = jnp.maximum(
        jnp.dot(x_ref[...], w_lin_ref[...], preferred_element_type=f32)
        + b_lin_ref[...], 0.0)

    # Multi-layer GRU (PyTorch gate order r, z, n), statically unrolled (L*S steps).
    for l in range(L):
        w_hh_l = w_hh_ref[l]                                        # [H, 3H]
        b_hn_l = b_hn_ref[l]                                        # [1, H]

        # Time-independent input-to-hidden projections for ALL steps at once.
        gi_all = (jnp.dot(seq_ref[...], w_ih_ref[l],
                          preferred_element_type=f32) + b_g_ref[l])  # [S*B, 3H]

        h = h0_ref[l].astype(f32)                                    # [B, H]
        for t in range(S):
            gi = gi_all[t * B:(t + 1) * B, :]                        # [B, 3H]
            gh = jnp.dot(h, w_hh_l, preferred_element_type=f32)      # [B, 3H]
            rz = jax.nn.sigmoid(gi[:, :2 * H] + gh[:, :2 * H])
            r, z = rz[:, :H], rz[:, H:]
            n = jnp.tanh(gi[:, 2 * H:] + r * (gh[:, 2 * H:] + b_hn_l))
            h = (1.0 - z) * n + z * h
            # This layer's output at step t is the next layer's input at step t.
            seq_ref[t * B:(t + 1) * B, :] = h
        hN_ref[l] = h.astype(hN_ref.dtype)


def motion_encoder_forward(x, h0, torch_params):
    """x: [B, S, I]; h0: [L, B, H]. Returns final hidden state [L, B, H].

    torch_params holds PyTorch-layout tensors:
      'w_lin' [H, I], 'b_lin' [H],
      'w_ih'  [L, 3H, H], 'w_hh' [L, 3H, H],
      'b_ih'  [L, 3H],    'b_hh' [L, 3H]     (gate order r, z, n)
    """
    B, S, I = x.shape
    L, _, H = h0.shape
    f32 = jnp.float32

    # ---- wrapper-side layout plumbing (done once, outside the kernel) ----
    w_lin = jnp.transpose(torch_params["w_lin"]).astype(f32)           # [I, H]
    b_lin = torch_params["b_lin"].reshape(1, H).astype(f32)

    # [L, 3H, D] -> [L, D, 3H] so the kernel computes x @ W, gates (r|z|n) on lanes.
    w_ih = jnp.transpose(torch_params["w_ih"].astype(f32), (0, 2, 1))
    w_hh = jnp.transpose(torch_params["w_hh"].astype(f32), (0, 2, 1))

    b_ih = torch_params["b_ih"].astype(f32).reshape(L, 1, 3 * H)
    b_hh = torch_params["b_hh"].astype(f32).reshape(L, 1, 3 * H)
    # r/z gates: sigmoid(gi + gh + b_ih + b_hh) -> fold both biases into input side.
    # n gate: b_hn is multiplied by r, so it must stay separate inside the recurrence.
    fold = jnp.concatenate([jnp.ones((1, 1, 2 * H), f32),
                            jnp.zeros((1, 1, H), f32)], axis=-1)
    b_g = b_ih + b_hh * fold                                           # [L, 1, 3H]
    b_hn = b_hh[:, :, 2 * H:]                                          # [L, 1, H]

    # Time-major, flattened to 2D so every matmul in the kernel is a plain 2-D dot.
    x_tm = jnp.transpose(x.astype(f32), (1, 0, 2)).reshape(S * B, I)

    vmem = pl.BlockSpec(memory_space=pltpu.MemorySpace.VMEM)
    return pl.pallas_call(
        _motion_encoder_kernel,
        out_shape=jax.ShapeDtypeStruct((L, B, H), f32),
        in_specs=[vmem] * 8,
        out_specs=vmem,
        scratch_shapes=[pltpu.VMEM((S * B, H), f32)],
    )(x_tm, h0.astype(f32), w_lin, b_lin, w_ih, w_hh, b_g, b_hn)


def _reference_forward(x, h0, torch_params):
    """Pure-JAX reference of the PyTorch forward (Linear+ReLU -> GRU, final_h)."""
    B, S, I = x.shape
    L, _, H = h0.shape
    hp = jax.lax.Precision.HIGHEST
    xp = jax.nn.relu(
        jnp.einsum('bsi,hi->bsh', x, torch_params["w_lin"], precision=hp)
        + torch_params["b_lin"])
    layer_in = xp
    finals = []
    for l in range(L):
        w_ih = torch_params["w_ih"][l]
        w_hh = torch_params["w_hh"][l]
        b_ih = torch_params["b_ih"][l]
        b_hh = torch_params["b_hh"][l]
        h = h0[l]
        outs = []
        for t in range(S):
            x_t = layer_in[:, t, :]
            gi = jnp.dot(x_t, w_ih.T, precision=hp) + b_ih
            gh = jnp.dot(h, w_hh.T, precision=hp) + b_hh
            r = jax.nn.sigmoid(gi[:, 0:H] + gh[:, 0:H])
            z = jax.nn.sigmoid(gi[:, H:2 * H] + gh[:, H:2 * H])
            n = jnp.tanh(gi[:, 2 * H:3 * H] + r * gh[:, 2 * H:3 * H])
            h = (1.0 - z) * n + z * h
            outs.append(h)
        layer_in = jnp.stack(outs, axis=1)
        finals.append(h)
    return jnp.stack(finals, axis=0)


if __name__ == "__main__":
    INPUT_SIZE = 4
    HIDDEN_SIZE = 32
    NUM_LAYERS = 2
    B, S = 2, 8
    H = HIDDEN_SIZE

    keys = iter(jax.random.split(jax.random.PRNGKey(0), 16))
    lin_bound = 1.0 / math.sqrt(INPUT_SIZE)    # nn.Linear default init bound
    gru_bound = 1.0 / math.sqrt(HIDDEN_SIZE)   # nn.GRU default init bound

    def u(shape, bound):
        return jax.random.uniform(next(keys), shape, jnp.float32, -bound, bound)

    torch_params = {
        "w_lin": u((H, INPUT_SIZE), lin_bound),         # Linear.weight [H, I]
        "b_lin": u((H,), lin_bound),                    # Linear.bias   [H]
        "w_ih": u((NUM_LAYERS, 3 * H, H), gru_bound),   # GRU weight_ih_l{k} (r,z,n)
        "w_hh": u((NUM_LAYERS, 3 * H, H), gru_bound),   # GRU weight_hh_l{k}
        "b_ih": u((NUM_LAYERS, 3 * H), gru_bound),
        "b_hh": u((NUM_LAYERS, 3 * H), gru_bound),
    }

    x = jax.random.normal(next(keys), (B, S, INPUT_SIZE), jnp.float32)
    h0 = jax.random.normal(next(keys), (NUM_LAYERS, B, H), jnp.float32)

    out = motion_encoder_forward(x, h0, torch_params)
    out = jax.block_until_ready(out)

    ref = _reference_forward(x, h0, torch_params)
    assert out.shape == (NUM_LAYERS, B, H), out.shape
    max_err = jnp.max(jnp.abs(out - ref))
    assert jnp.allclose(out, ref, atol=2e-3, rtol=2e-3), \
        f"mismatch vs. pure-JAX reference (max abs err {max_err})"

    print("KERNEL_OK")
</pallas_src>

<mosaic_0001>
module attributes {stable_mosaic.version = 11 : i64} {
  func.func @_motion_encoder_kernel(%arg0: memref<16x4xf32, #tpu.memory_space<vmem>>, %arg1: memref<2x2x32xf32, #tpu.memory_space<vmem>>, %arg2: memref<4x32xf32, #tpu.memory_space<vmem>>, %arg3: memref<1x32xf32, #tpu.memory_space<vmem>>, %arg4: memref<2x32x96xf32, #tpu.memory_space<vmem>>, %arg5: memref<2x32x96xf32, #tpu.memory_space<vmem>>, %arg6: memref<2x1x96xf32, #tpu.memory_space<vmem>>, %arg7: memref<2x1x32xf32, #tpu.memory_space<vmem>>, %arg8: memref<2x2x32xf32, #tpu.memory_space<vmem>>, %arg9: memref<16x32xf32, #tpu.memory_space<vmem>>) attributes {dimension_semantics = [], scalar_prefetch = 0 : i64, scratch_operands = 1 : i64, tpu.core_type = #tpu.core_type<tc>} {
    %c0 = arith.constant 0 : index
    %c0_0 = arith.constant 0 : index
    %0 = vector.load %arg0[%c0, %c0_0] : memref<16x4xf32, #tpu.memory_space<vmem>>, vector<16x4xf32>
    %c0_1 = arith.constant 0 : index
    %c0_2 = arith.constant 0 : index
    %1 = vector.load %arg2[%c0_1, %c0_2] : memref<4x32xf32, #tpu.memory_space<vmem>>, vector<4x32xf32>
    %cst = arith.constant dense<0.000000e+00> : vector<16x32xf32>
    %2 = tpu.matmul %0, %1, %cst {dimension_numbers = #tpu.dot_dimension_numbers<[1], [0], [0], [1], [0, 0, 1, 1], [], []>} : vector<16x4xf32>, vector<4x32xf32>, vector<16x32xf32> -> vector<16x32xf32>
    %c0_3 = arith.constant 0 : index
    %c0_4 = arith.constant 0 : index
    %3 = vector.load %arg3[%c0_3, %c0_4] : memref<1x32xf32, #tpu.memory_space<vmem>>, vector<1x32xf32>
    %4 = vector.broadcast %3 : vector<1x32xf32> to vector<16x32xf32>
    %5 = arith.addf %2, %4 : vector<16x32xf32>
    %cst_5 = arith.constant 0.000000e+00 : f32
    %6 = vector.broadcast %cst_5 : f32 to vector<16x32xf32>
    %7 = arith.maximumf %5, %6 : vector<16x32xf32>
    %c0_6 = arith.constant 0 : index
    %c0_7 = arith.constant 0 : index
    %8 = vector.load %arg9[%c0_6, %c0_7] : memref<16x32xf32, #tpu.memory_space<vmem>>, vector<16x32xf32>
    tpu.vector_store %arg9[%c0_6, %c0_7], %7 {strides = array<i32>} : memref<16x32xf32, #tpu.memory_space<vmem>>, vector<16x32xf32>,
    %c0_8 = arith.constant 0 : index
    %c0_9 = arith.constant 0 : index
    %c0_10 = arith.constant 0 : index
    %9 = vector.load %arg5[%c0_8, %c0_9, %c0_10] : memref<2x32x96xf32, #tpu.memory_space<vmem>>, vector<1x32x96xf32>
    %10 = vector.shape_cast %9 : vector<1x32x96xf32> to vector<32x96xf32>
    %c0_11 = arith.constant 0 : index
    %c0_12 = arith.constant 0 : index
    %c0_13 = arith.constant 0 : index
    %11 = vector.load %arg7[%c0_11, %c0_12, %c0_13] : memref<2x1x32xf32, #tpu.memory_space<vmem>>, vector<1x1x32xf32>
    %12 = vector.shape_cast %11 : vector<1x1x32xf32> to vector<1x32xf32>
    %c0_14 = arith.constant 0 : index
    %c0_15 = arith.constant 0 : index
    %13 = vector.load %arg9[%c0_14, %c0_15] : memref<16x32xf32, #tpu.memory_space<vmem>>, vector<16x32xf32>
    %c0_16 = arith.constant 0 : index
    %c0_17 = arith.constant 0 : index
    %c0_18 = arith.constant 0 : index
    %14 = vector.load %arg4[%c0_16, %c0_17, %c0_18] : memref<2x32x96xf32, #tpu.memory_space<vmem>>, vector<1x32x96xf32>
    %15 = vector.shape_cast %14 : vector<1x32x96xf32> to vector<32x96xf32>
    %cst_19 = arith.constant dense<0.000000e+00> : vector<16x96xf32>
    %16 = tpu.matmul %13, %15, %cst_19 {dimension_numbers = #tpu.dot_dimension_numbers<[1], [0], [0], [1], [0, 0, 1, 1], [], []>} : vector<16x32xf32>, vector<32x96xf32>, vector<16x96xf32> -> vector<16x96xf32>
    %c0_20 = arith.constant 0 : index
    %c0_21 = arith.constant 0 : index
    %c0_22 = arith.constant 0 : index
    %17 = vector.load %arg6[%c0_20, %c0_21, %c0_22] : memref<2x1x96xf32, #tpu.memory_space<vmem>>, vector<1x1x96xf32>
    %18 = vector.shape_cast %17 : vector<1x1x96xf32> to vector<1x96xf32>
    %19 = vector.broadcast %18 : vector<1x96xf32> to vector<16x96xf32>
    %20 = arith.addf %16, %19 : vector<16x96xf32>
    %c0_23 = arith.constant 0 : index
    %c0_24 = arith.constant 0 : index
    %c0_25 = arith.constant 0 : index
    %21 = vector.load %arg1[%c0_23, %c0_24, %c0_25] : memref<2x2x32xf32, #tpu.memory_space<vmem>>, vector<1x2x32xf32>
    %22 = vector.shape_cast %21 : vector<1x2x32xf32> to vector<2x32xf32>
    %23 = vector.extract_strided_slice %20 {offsets = [0, 0], sizes = [2, 96], strides = [1, 1]} : vector<16x96xf32> to vector<2x96xf32>
    %cst_26 = arith.constant dense<0.000000e+00> : vector<2x96xf32>
    %24 = tpu.matmul %22, %10, %cst_26 {dimension_numbers = #tpu.dot_dimension_numbers<[1], [0], [0], [1], [0, 0, 1, 1], [], []>} : vector<2x32xf32>, vector<32x96xf32>, vector<2x96xf32> -> vector<2x96xf32>
    %25 = vector.extract_strided_slice %23 {offsets = [0, 0], sizes = [2, 64], strides = [1, 1]} : vector<2x96xf32> to vector<2x64xf32>
    %26 = vector.extract_strided_slice %24 {offsets = [0, 0], sizes = [2, 64], strides = [1, 1]} : vector<2x96xf32> to vector<2x64xf32>
    %27 = arith.addf %25, %26 : vector<2x64xf32>
    %28 = arith.negf %27 : vector<2x64xf32>
    %29 = math.exp %28 : vector<2x64xf32>
    %cst_27 = arith.constant 1.000000e+00 : f32
    %30 = vector.broadcast %cst_27 : f32 to vector<2x64xf32>
    %31 = arith.addf %30, %29 : vector<2x64xf32>
    %32 = arith.divf %30, %31 : vector<2x64xf32>
    %33 = vector.extract_strided_slice %32 {offsets = [0, 0], sizes = [2, 32], strides = [1, 1]} : vector<2x64xf32> to vector<2x32xf32>
    %34 = vector.extract_strided_slice %32 {offsets = [0, 32], sizes = [2, 32], strides = [1, 1]} : vector<2x64xf32> to vector<2x32xf32>
    %35 = vector.extract_strided_slice %23 {offsets = [0, 64], sizes = [2, 32], strides = [1, 1]} : vector<2x96xf32> to vector<2x32xf32>
    %36 = vector.extract_strided_slice %24 {offsets = [0, 64], sizes = [2, 32], strides = [1, 1]} : vector<2x96xf32> to vector<2x32xf32>
    %37 = vector.broadcast %12 : vector<1x32xf32> to vector<2x32xf32>
    %38 = arith.addf %36, %37 : vector<2x32xf32>
    %39 = arith.mulf %33, %38 : vector<2x32xf32>
    %40 = arith.addf %35, %39 : vector<2x32xf32>
    %41 = math.tanh %40 : vector<2x32xf32>
    %cst_28 = arith.constant 1.000000e+00 : f32
    %42 = vector.broadcast %cst_28 : f32 to vector<2x32xf32>
    %43 = arith.subf %42, %34 : vector<2x32xf32>
    %44 = arith.mulf %43, %41 : vector<2x32xf32>
    %45 = arith.mulf %34, %22 : vector<2x32xf32>
    %46 = arith.addf %44, %45 : vector<2x32xf32>
    %c0_29 = arith.constant 0 : index
    %c0_30 = arith.constant 0 : index
    %47 = vector.load %arg9[%c0_29, %c0_30] : memref<16x32xf32, #tpu.memory_space<vmem>>, vector<2x32xf32>
    tpu.vector_store %arg9[%c0_29, %c0_30], %46 {strides = array<i32>} : memref<16x32xf32, #tpu.memory_space<vmem>>, vector<2x32xf32>,
    %48 = vector.extract_strided_slice %20 {offsets = [2, 0], sizes = [2, 96], strides = [1, 1]} : vector<16x96xf32> to vector<2x96xf32>
    %cst_31 = arith.constant dense<0.000000e+00> : vector<2x96xf32>
    %49 = tpu.matmul %46, %10, %cst_31 {dimension_numbers = #tpu.dot_dimension_numbers<[1], [0], [0], [1], [0, 0, 1, 1], [], []>} : vector<2x32xf32>, vector<32x96xf32>, vector<2x96xf32> -> vector<2x96xf32>
    %50 = vector.extract_strided_slice %48 {offsets = [0, 0], sizes = [2, 64], strides = [1, 1]} : vector<2x96xf32> to vector<2x64xf32>
    %51 = vector.extract_strided_slice %49 {offsets = [0, 0], sizes = [2, 64], strides = [1, 1]} : vector<2x96xf32> to vector<2x64xf32>
    %52 = arith.addf %50, %51 : vector<2x64xf32>
    %53 = arith.negf %52 : vector<2x64xf32>
    %54 = math.exp %53 : vector<2x64xf32>
    %cst_32 = arith.constant 1.000000e+00 : f32
    %55 = vector.broadcast %cst_32 : f32 to vector<2x64xf32>
    %56 = arith.addf %55, %54 : vector<2x64xf32>
    %57 = arith.divf %55, %56 : vector<2x64xf32>
    %58 = vector.extract_strided_slice %57 {offsets = [0, 0], sizes = [2, 32], strides = [1, 1]} : vector<2x64xf32> to vector<2x32xf32>
    %59 = vector.extract_strided_slice %57 {offsets = [0, 32], sizes = [2, 32], strides = [1, 1]} : vector<2x64xf32> to vector<2x32xf32>
    %60 = vector.extract_strided_slice %48 {offsets = [0, 64], sizes = [2, 32], strides = [1, 1]} : vector<2x96xf32> to vector<2x32xf32>
    %61 = vector.extract_strided_slice %49 {offsets = [0, 64], sizes = [2, 32], strides = [1, 1]} : vector<2x96xf32> to vector<2x32xf32>
    %62 = vector.broadcast %12 : vector<1x32xf32> to vector<2x32xf32>
    %63 = arith.addf %61, %62 : vector<2x32xf32>
    %64 = arith.mulf %58, %63 : vector<2x32xf32>
    %65 = arith.addf %60, %64 : vector<2x32xf32>
    %66 = math.tanh %65 : vector<2x32xf32>
    %cst_33 = arith.constant 1.000000e+00 : f32
    %67 = vector.broadcast %cst_33 : f32 to vector<2x32xf32>
    %68 = arith.subf %67, %59 : vector<2x32xf32>
    %69 = arith.mulf %68, %66 : vector<2x32xf32>
    %70 = arith.mulf %59, %46 : vector<2x32xf32>
    %71 = arith.addf %69, %70 : vector<2x32xf32>
    %c2 = arith.constant 2 : index
    %c0_34 = arith.constant 0 : index
    %72 = vector.load %arg9[%c2, %c0_34] : memref<16x32xf32, #tpu.memory_space<vmem>>, vector<2x32xf32>
    tpu.vector_store %arg9[%c2, %c0_34], %71 {strides = array<i32>} : memref<16x32xf32, #tpu.memory_space<vmem>>, vector<2x32xf32>,
    %73 = vector.extract_strided_slice %20 {offsets = [4, 0], sizes = [2, 96], strides = [1, 1]} : vector<16x96xf32> to vector<2x96xf32>
    %cst_35 = arith.constant dense<0.000000e+00> : vector<2x96xf32>
    %74 = tpu.matmul %71, %10, %cst_35 {dimension_numbers = #tpu.dot_dimension_numbers<[1], [0], [0], [1], [0, 0, 1, 1], [], []>} : vector<2x32xf32>, vector<32x96xf32>, vector<2x96xf32> -> vector<2x96xf32>
    %75 = vector.extract_strided_slice %73 {offsets = [0, 0], sizes = [2, 64], strides = [1, 1]} : vector<2x96xf32> to vector<2x64xf32>
    %76 = vector.extract_strided_slice %74 {offsets = [0, 0], sizes = [2, 64], strides = [1, 1]} : vector<2x96xf32> to vector<2x64xf32>
    %77 = arith.addf %75, %76 : vector<2x64xf32>
    %78 = arith.negf %77 : vector<2x64xf32>
    %79 = math.exp %78 : vector<2x64xf32>
    %cst_36 = arith.constant 1.000000e+00 : f32
    %80 = vector.broadcast %cst_36 : f32 to vector<2x64xf32>
    %81 = arith.addf %80, %79 : vector<2x64xf32>
    %82 = arith.divf %80, %81 : vector<2x64xf32>
    %83 = vector.extract_strided_slice %82 {offsets = [0, 0], sizes = [2, 32], strides = [1, 1]} : vector<2x64xf32> to vector<2x32xf32>
    %84 = vector.extract_strided_slice %82 {offsets = [0, 32], sizes = [2, 32], strides = [1, 1]} : vector<2x64xf32> to vector<2x32xf32>
    %85 = vector.extract_strided_slice %73 {offsets = [0, 64], sizes = [2, 32], strides = [1, 1]} : vector<2x96xf32> to vector<2x32xf32>
    %86 = vector.extract_strided_slice %74 {offsets = [0, 64], sizes = [2, 32], strides = [1, 1]} : vector<2x96xf32> to vector<2x32xf32>
    %87 = vector.broadcast %12 : vector<1x32xf32> to vector<2x32xf32>
    %88 = arith.addf %86, %87 : vector<2x32xf32>
    %89 = arith.mulf %83, %88 : vector<2x32xf32>
    %90 = arith.addf %85, %89 : vector<2x32xf32>
    %91 = math.tanh %90 : vector<2x32xf32>
    %cst_37 = arith.constant 1.000000e+00 : f32
    %92 = vector.broadcast %cst_37 : f32 to vector<2x32xf32>
    %93 = arith.subf %92, %84 : vector<2x32xf32>
    %94 = arith.mulf %93, %91 : vector<2x32xf32>
    %95 = arith.mulf %84, %71 : vector<2x32xf32>
    %96 = arith.addf %94, %95 : vector<2x32xf32>
    %c4 = arith.constant 4 : index
    %c0_38 = arith.constant 0 : index
    %97 = vector.load %arg9[%c4, %c0_38] : memref<16x32xf32, #tpu.memory_space<vmem>>, vector<2x32xf32>
    tpu.vector_store %arg9[%c4, %c0_38], %96 {strides = array<i32>} : memref<16x32xf32, #tpu.memory_space<vmem>>, vector<2x32xf32>,
    %98 = vector.extract_strided_slice %20 {offsets = [6, 0], sizes = [2, 96], strides = [1, 1]} : vector<16x96xf32> to vector<2x96xf32>
    %cst_39 = arith.constant dense<0.000000e+00> : vector<2x96xf32>
    %99 = tpu.matmul %96, %10, %cst_39 {dimension_numbers = #tpu.dot_dimension_numbers<[1], [0], [0], [1], [0, 0, 1, 1], [], []>} : vector<2x32xf32>, vector<32x96xf32>, vector<2x96xf32> -> vector<2x96xf32>
    %100 = vector.extract_strided_slice %98 {offsets = [0, 0], sizes = [2, 64], strides = [1, 1]} : vector<2x96xf32> to vector<2x64xf32>
    %101 = vector.extract_strided_slice %99 {offsets = [0, 0], sizes = [2, 64], strides = [1, 1]} : vector<2x96xf32> to vector<2x64xf32>
    %102 = arith.addf %100, %101 : vector<2x64xf32>
    %103 = arith.negf %102 : vector<2x64xf32>
    %104 = math.exp %103 : vector<2x64xf32>
    %cst_40 = arith.constant 1.000000e+00 : f32
    %105 = vector.broadcast %cst_40 : f32 to vector<2x64xf32>
    %106 = arith.addf %105, %104 : vector<2x64xf32>
    %107 = arith.divf %105, %106 : vector<2x64xf32>
    %108 = vector.extract_strided_slice %107 {offsets = [0, 0], sizes = [2, 32], strides = [1, 1]} : vector<2x64xf32> to vector<2x32xf32>
    %109 = vector.extract_strided_slice %107 {offsets = [0, 32], sizes = [2, 32], strides = [1, 1]} : vector<2x64xf32> to vector<2x32xf32>
    %110 = vector.extract_strided_slice %98 {offsets = [0, 64], sizes = [2, 32], strides = [1, 1]} : vector<2x96xf32> to vector<2x32xf32>
    %111 = vector.extract_strided_slice %99 {offsets = [0, 64], sizes = [2, 32], strides = [1, 1]} : vector<2x96xf32> to vector<2x32xf32>
    %112 = vector.broadcast %12 : vector<1x32xf32> to vector<2x32xf32>
    %113 = arith.addf %111, %112 : vector<2x32xf32>
    %114 = arith.mulf %108, %113 : vector<2x32xf32>
    %115 = arith.addf %110, %114 : vector<2x32xf32>
    %116 = math.tanh %115 : vector<2x32xf32>
    %cst_41 = arith.constant 1.000000e+00 : f32
    %117 = vector.broadcast %cst_41 : f32 to vector<2x32xf32>
    %118 = arith.subf %117, %109 : vector<2x32xf32>
    %119 = arith.mulf %118, %116 : vector<2x32xf32>
    %120 = arith.mulf %109, %96 : vector<2x32xf32>
    %121 = arith.addf %119, %120 : vector<2x32xf32>
    %c6 = arith.constant 6 : index
    %c0_42 = arith.constant 0 : index
    %122 = vector.load %arg9[%c6, %c0_42] : memref<16x32xf32, #tpu.memory_space<vmem>>, vector<2x32xf32>
    tpu.vector_store %arg9[%c6, %c0_42], %121 {strides = array<i32>} : memref<16x32xf32, #tpu.memory_space<vmem>>, vector<2x32xf32>,
    %123 = vector.extract_strided_slice %20 {offsets = [8, 0], sizes = [2, 96], strides = [1, 1]} : vector<16x96xf32> to vector<2x96xf32>
    %cst_43 = arith.constant dense<0.000000e+00> : vector<2x96xf32>
    %124 = tpu.matmul %121, %10, %cst_43 {dimension_numbers = #tpu.dot_dimension_numbers<[1], [0], [0], [1], [0, 0, 1, 1], [], []>} : vector<2x32xf32>, vector<32x96xf32>, vector<2x96xf32> -> vector<2x96xf32>
    %125 = vector.extract_strided_slice %123 {offsets = [0, 0], sizes = [2, 64], strides = [1, 1]} : vector<2x96xf32> to vector<2x64xf32>
    %126 = vector.extract_strided_slice %124 {offsets = [0, 0], sizes = [2, 64], strides = [1, 1]} : vector<2x96xf32> to vector<2x64xf32>
    %127 = arith.addf %125, %126 : vector<2x64xf32>
    %128 = arith.negf %127 : vector<2x64xf32>
    %129 = math.exp %128 : vector<2x64xf32>
    %cst_44 = arith.constant 1.000000e+00 : f32
    %130 = vector.broadcast %cst_44 : f32 to vector<2x64xf32>
    %131 = arith.addf %130, %129 : vector<2x64xf32>
    %132 = arith.divf %130, %131 : vector<2x64xf32>
    %133 = vector.extract_strided_slice %132 {offsets = [0, 0], sizes = [2, 32], strides = [1, 1]} : vector<2x64xf32> to vector<2x32xf32>
    %134 = vector.extract_strided_slice %132 {offsets = [0, 32], sizes = [2, 32], strides = [1, 1]} : vector<2x64xf32> to vector<2x32xf32>
    %135 = vector.extract_strided_slice %123 {offsets = [0, 64], sizes = [2, 32], strides = [1, 1]} : vector<2x96xf32> to vector<2x32xf32>
    %136 = vector.extract_strided_slice %124 {offsets = [0, 64], sizes = [2, 32], strides = [1, 1]} : vector<2x96xf32> to vector<2x32xf32>
    %137 = vector.broadcast %12 : vector<1x32xf32> to vector<2x32xf32>
    %138 = arith.addf %136, %137 : vector<2x32xf32>
    %139 = arith.mulf %133, %138 : vector<2x32xf32>
    %140 = arith.addf %135, %139 : vector<2x32xf32>
    %141 = math.tanh %140 : vector<2x32xf32>
    %cst_45 = arith.constant 1.000000e+00 : f32
    %142 = vector.broadcast %cst_45 : f32 to vector<2x32xf32>
    %143 = arith.subf %142, %134 : vector<2x32xf32>
    %144 = arith.mulf %143, %141 : vector<2x32xf32>
    %145 = arith.mulf %134, %121 : vector<2x32xf32>
    %146 = arith.addf %144, %145 : vector<2x32xf32>
    %c8 = arith.constant 8 : index
    %c0_46 = arith.constant 0 : index
    %147 = vector.load %arg9[%c8, %c0_46] : memref<16x32xf32, #tpu.memory_space<vmem>>, vector<2x32xf32>
    tpu.vector_store %arg9[%c8, %c0_46], %146 {strides = array<i32>} : memref<16x32xf32, #tpu.memory_space<vmem>>, vector<2x32xf32>,
    %148 = vector.extract_strided_slice %20 {offsets = [10, 0], sizes = [2, 96], strides = [1, 1]} : vector<16x96xf32> to vector<2x96xf32>
    %cst_47 = arith.constant dense<0.000000e+00> : vector<2x96xf32>
    %149 = tpu.matmul %146, %10, %cst_47 {dimension_numbers = #tpu.dot_dimension_numbers<[1], [0], [0], [1], [0, 0, 1, 1], [], []>} : vector<2x32xf32>, vector<32x96xf32>, vector<2x96xf32> -> vector<2x96xf32>
    %150 = vector.extract_strided_slice %148 {offsets = [0, 0], sizes = [2, 64], strides = [1, 1]} : vector<2x96xf32> to vector<2x64xf32>
    %151 = vector.extract_strided_slice %149 {offsets = [0, 0], sizes = [2, 64], strides = [1, 1]} : vector<2x96xf32> to vector<2x64xf32>
    %152 = arith.addf %150, %151 : vector<2x64xf32>
    %153 = arith.negf %152 : vector<2x64xf32>
    %154 = math.exp %153 : vector<2x64xf32>
    %cst_48 = arith.constant 1.000000e+00 : f32
    %155 = vector.broadcast %cst_48 : f32 to vector<2x64xf32>
    %156 = arith.addf %155, %154 : vector<2x64xf32>
    %157 = arith.divf %155, %156 : vector<2x64xf32>
    %158 = vector.extract_strided_slice %157 {offsets = [0, 0], sizes = [2, 32], strides = [1, 1]} : vector<2x64xf32> to vector<2x32xf32>
    %159 = vector.extract_strided_slice %157 {offsets = [0, 32], sizes = [2, 32], strides = [1, 1]} : vector<2x64xf32> to vector<2x32xf32>
    %160 = vector.extract_strided_slice %148 {offsets = [0, 64], sizes = [2, 32], strides = [1, 1]} : vector<2x96xf32> to vector<2x32xf32>
    %161 = vector.extract_strided_slice %149 {offsets = [0, 64], sizes = [2, 32], strides = [1, 1]} : vector<2x96xf32> to vector<2x32xf32>
    %162 = vector.broadcast %12 : vector<1x32xf32> to vector<2x32xf32>
    %163 = arith.addf %161, %162 : vector<2x32xf32>
    %164 = arith.mulf %158, %163 : vector<2x32xf32>
    %165 = arith.addf %160, %164 : vector<2x32xf32>
    %166 = math.tanh %165 : vector<2x32xf32>
    %cst_49 = arith.constant 1.000000e+00 : f32
    %167 = vector.broadcast %cst_49 : f32 to vector<2x32xf32>
    %168 = arith.subf %167, %159 : vector<2x32xf32>
    %169 = arith.mulf %168, %166 : vector<2x32xf32>
    %170 = arith.mulf %159, %146 : vector<2x32xf32>
    %171 = arith.addf %169, %170 : vector<2x32xf32>
    %c10 = arith.constant 10 : index
    %c0_50 = arith.constant 0 : index
    %172 = vector.load %arg9[%c10, %c0_50] : memref<16x32xf32, #tpu.memory_space<vmem>>, vector<2x32xf32>
    tpu.vector_store %arg9[%c10, %c0_50], %171 {strides = array<i32>} : memref<16x32xf32, #tpu.memory_space<vmem>>, vector<2x32xf32>,
    %173 = vector.extract_strided_slice %20 {offsets = [12, 0], sizes = [2, 96], strides = [1, 1]} : vector<16x96xf32> to vector<2x96xf32>
    %cst_51 = arith.constant dense<0.000000e+00> : vector<2x96xf32>
    %174 = tpu.matmul %171, %10, %cst_51 {dimension_numbers = #tpu.dot_dimension_numbers<[1], [0], [0], [1], [0, 0, 1, 1], [], []>} : vector<2x32xf32>, vector<32x96xf32>, vector<2x96xf32> -> vector<2x96xf32>
    %175 = vector.extract_strided_slice %173 {offsets = [0, 0], sizes = [2, 64], strides = [1, 1]} : vector<2x96xf32> to vector<2x64xf32>
    %176 = vector.extract_strided_slice %174 {offsets = [0, 0], sizes = [2, 64], strides = [1, 1]} : vector<2x96xf32> to vector<2x64xf32>
    %177 = arith.addf %175, %176 : vector<2x64xf32>
    %178 = arith.negf %177 : vector<2x64xf32>
    %179 = math.exp %178 : vector<2x64xf32>
    %cst_52 = arith.constant 1.000000e+00 : f32
    %180 = vector.broadcast %cst_52 : f32 to vector<2x64xf32>
    %181 = arith.addf %180, %179 : vector<2x64xf32>
    %182 = arith.divf %180, %181 : vector<2x64xf32>
    %183 = vector.extract_strided_slice %182 {offsets = [0, 0], sizes = [2, 32], strides = [1, 1]} : vector<2x64xf32> to vector<2x32xf32>
    %184 = vector.extract_strided_slice %182 {offsets = [0, 32], sizes = [2, 32], strides = [1, 1]} : vector<2x64xf32> to vector<2x32xf32>
    %185 = vector.extract_strided_slice %173 {offsets = [0, 64], sizes = [2, 32], strides = [1, 1]} : vector<2x96xf32> to vector<2x32xf32>
    %186 = vector.extract_strided_slice %174 {offsets = [0, 64], sizes = [2, 32], strides = [1, 1]} : vector<2x96xf32> to vector<2x32xf32>
    %187 = vector.broadcast %12 : vector<1x32xf32> to vector<2x32xf32>
    %188 = arith.addf %186, %187 : vector<2x32xf32>
    %189 = arith.mulf %183, %188 : vector<2x32xf32>
    %190 = arith.addf %185, %189 : vector<2x32xf32>
    %191 = math.tanh %190 : vector<2x32xf32>
    %cst_53 = arith.constant 1.000000e+00 : f32
    %192 = vector.broadcast %cst_53 : f32 to vector<2x32xf32>
    %193 = arith.subf %192, %184 : vector<2x32xf32>
    %194 = arith.mulf %193, %191 : vector<2x32xf32>
    %195 = arith.mulf %184, %171 : vector<2x32xf32>
    %196 = arith.addf %194, %195 : vector<2x32xf32>
    %c12 = arith.constant 12 : index
    %c0_54 = arith.constant 0 : index
    %197 = vector.load %arg9[%c12, %c0_54] : memref<16x32xf32, #tpu.memory_space<vmem>>, vector<2x32xf32>
    tpu.vector_store %arg9[%c12, %c0_54], %196 {strides = array<i32>} : memref<16x32xf32, #tpu.memory_space<vmem>>, vector<2x32xf32>,
    %198 = vector.extract_strided_slice %20 {offsets = [14, 0], sizes = [2, 96], strides = [1, 1]} : vector<16x96xf32> to vector<2x96xf32>
    %cst_55 = arith.constant dense<0.000000e+00> : vector<2x96xf32>
    %199 = tpu.matmul %196, %10, %cst_55 {dimension_numbers = #tpu.dot_dimension_numbers<[1], [0], [0], [1], [0, 0, 1, 1], [], []>} : vector<2x32xf32>, vector<32x96xf32>, vector<2x96xf32> -> vector<2x96xf32>
    %200 = vector.extract_strided_slice %198 {offsets = [0, 0], sizes = [2, 64], strides = [1, 1]} : vector<2x96xf32> to vector<2x64xf32>
    %201 = vector.extract_strided_slice %199 {offsets = [0, 0], sizes = [2, 64], strides = [1, 1]} : vector<2x96xf32> to vector<2x64xf32>
    %202 = arith.addf %200, %201 : vector<2x64xf32>
    %203 = arith.negf %202 : vector<2x64xf32>
    %204 = math.exp %203 : vector<2x64xf32>
    %cst_56 = arith.constant 1.000000e+00 : f32
    %205 = vector.broadcast %cst_56 : f32 to vector<2x64xf32>
    %206 = arith.addf %205, %204 : vector<2x64xf32>
    %207 = arith.divf %205, %206 : vector<2x64xf32>
    %208 = vector.extract_strided_slice %207 {offsets = [0, 0], sizes = [2, 32], strides = [1, 1]} : vector<2x64xf32> to vector<2x32xf32>
    %209 = vector.extract_strided_slice %207 {offsets = [0, 32], sizes = [2, 32], strides = [1, 1]} : vector<2x64xf32> to vector<2x32xf32>
    %210 = vector.extract_strided_slice %198 {offsets = [0, 64], sizes = [2, 32], strides = [1, 1]} : vector<2x96xf32> to vector<2x32xf32>
    %211 = vector.extract_strided_slice %199 {offsets = [0, 64], sizes = [2, 32], strides = [1, 1]} : vector<2x96xf32> to vector<2x32xf32>
    %212 = vector.broadcast %12 : vector<1x32xf32> to vector<2x32xf32>
    %213 = arith.addf %211, %212 : vector<2x32xf32>
    %214 = arith.mulf %208, %213 : vector<2x32xf32>
    %215 = arith.addf %210, %214 : vector<2x32xf32>
    %216 = math.tanh %215 : vector<2x32xf32>
    %cst_57 = arith.constant 1.000000e+00 : f32
    %217 = vector.broadcast %cst_57 : f32 to vector<2x32xf32>
    %218 = arith.subf %217, %209 : vector<2x32xf32>
    %219 = arith.mulf %218, %216 : vector<2x32xf32>
    %220 = arith.mulf %209, %196 : vector<2x32xf32>
    %221 = arith.addf %219, %220 : vector<2x32xf32>
    %c14 = arith.constant 14 : index
    %c0_58 = arith.constant 0 : index
    %222 = vector.load %arg9[%c14, %c0_58] : memref<16x32xf32, #tpu.memory_space<vmem>>, vector<2x32xf32>
    tpu.vector_store %arg9[%c14, %c0_58], %221 {strides = array<i32>} : memref<16x32xf32, #tpu.memory_space<vmem>>, vector<2x32xf32>,
    %c0_59 = arith.constant 0 : index
    %c0_60 = arith.constant 0 : index
    %c0_61 = arith.constant 0 : index
    %223 = vector.load %arg8[%c0_59, %c0_60, %c0_61] : memref<2x2x32xf32, #tpu.memory_space<vmem>>, vector<1x2x32xf32>
    %224 = vector.shape_cast %223 : vector<1x2x32xf32> to vector<2x32xf32>
    %225 = vector.shape_cast %221 : vector<2x32xf32> to vector<1x2x32xf32>
    tpu.vector_store %arg8[%c0_59, %c0_60, %c0_61], %225 {strides = array<i32>} : memref<2x2x32xf32, #tpu.memory_space<vmem>>, vector<1x2x32xf32>,
    %c1 = arith.constant 1 : index
    %c0_62 = arith.constant 0 : index
    %c0_63 = arith.constant 0 : index
    %226 = vector.load %arg5[%c1, %c0_62, %c0_63] : memref<2x32x96xf32, #tpu.memory_space<vmem>>, vector<1x32x96xf32>
    %227 = vector.shape_cast %226 : vector<1x32x96xf32> to vector<32x96xf32>
    %c1_64 = arith.constant 1 : index
    %c0_65 = arith.constant 0 : index
    %c0_66 = arith.constant 0 : index
    %228 = vector.load %arg7[%c1_64, %c0_65, %c0_66] : memref<2x1x32xf32, #tpu.memory_space<vmem>>, vector<1x1x32xf32>
    %229 = vector.shape_cast %228 : vector<1x1x32xf32> to vector<1x32xf32>
    %c0_67 = arith.constant 0 : index
    %c0_68 = arith.constant 0 : index
    %230 = vector.load %arg9[%c0_67, %c0_68] : memref<16x32xf32, #tpu.memory_space<vmem>>, vector<16x32xf32>
    %c1_69 = arith.constant 1 : index
    %c0_70 = arith.constant 0 : index
    %c0_71 = arith.constant 0 : index
    %231 = vector.load %arg4[%c1_69, %c0_70, %c0_71] : memref<2x32x96xf32, #tpu.memory_space<vmem>>, vector<1x32x96xf32>
    %232 = vector.shape_cast %231 : vector<1x32x96xf32> to vector<32x96xf32>
    %cst_72 = arith.constant dense<0.000000e+00> : vector<16x96xf32>
    %233 = tpu.matmul %230, %232, %cst_72 {dimension_numbers = #tpu.dot_dimension_numbers<[1], [0], [0], [1], [0, 0, 1, 1], [], []>} : vector<16x32xf32>, vector<32x96xf32>, vector<16x96xf32> -> vector<16x96xf32>
    %c1_73 = arith.constant 1 : index
    %c0_74 = arith.constant 0 : index
    %c0_75 = arith.constant 0 : index
    %234 = vector.load %arg6[%c1_73, %c0_74, %c0_75] : memref<2x1x96xf32, #tpu.memory_space<vmem>>, vector<1x1x96xf32>
    %235 = vector.shape_cast %234 : vector<1x1x96xf32> to vector<1x96xf32>
    %236 = vector.broadcast %235 : vector<1x96xf32> to vector<16x96xf32>
    %237 = arith.addf %233, %236 : vector<16x96xf32>
    %c1_76 = arith.constant 1 : index
    %c0_77 = arith.constant 0 : index
    %c0_78 = arith.constant 0 : index
    %238 = vector.load %arg1[%c1_76, %c0_77, %c0_78] : memref<2x2x32xf32, #tpu.memory_space<vmem>>, vector<1x2x32xf32>
    %239 = vector.shape_cast %238 : vector<1x2x32xf32> to vector<2x32xf32>
    %240 = vector.extract_strided_slice %237 {offsets = [0, 0], sizes = [2, 96], strides = [1, 1]} : vector<16x96xf32> to vector<2x96xf32>
    %cst_79 = arith.constant dense<0.000000e+00> : vector<2x96xf32>
    %241 = tpu.matmul %239, %227, %cst_79 {dimension_numbers = #tpu.dot_dimension_numbers<[1], [0], [0], [1], [0, 0, 1, 1], [], []>} : vector<2x32xf32>, vector<32x96xf32>, vector<2x96xf32> -> vector<2x96xf32>
    %242 = vector.extract_strided_slice %240 {offsets = [0, 0], sizes = [2, 64], strides = [1, 1]} : vector<2x96xf32> to vector<2x64xf32>
    %243 = vector.extract_strided_slice %241 {offsets = [0, 0], sizes = [2, 64], strides = [1, 1]} : vector<2x96xf32> to vector<2x64xf32>
    %244 = arith.addf %242, %243 : vector<2x64xf32>
    %245 = arith.negf %244 : vector<2x64xf32>
    %246 = math.exp %245 : vector<2x64xf32>
    %cst_80 = arith.constant 1.000000e+00 : f32
    %247 = vector.broadcast %cst_80 : f32 to vector<2x64xf32>
    %248 = arith.addf %247, %246 : vector<2x64xf32>
    %249 = arith.divf %247, %248 : vector<2x64xf32>
    %250 = vector.extract_strided_slice %249 {offsets = [0, 0], sizes = [2, 32], strides = [1, 1]} : vector<2x64xf32> to vector<2x32xf32>
    %251 = vector.extract_strided_slice %249 {offsets = [0, 32], sizes = [2, 32], strides = [1, 1]} : vector<2x64xf32> to vector<2x32xf32>
    %252 = vector.extract_strided_slice %240 {offsets = [0, 64], sizes = [2, 32], strides = [1, 1]} : vector<2x96xf32> to vector<2x32xf32>
    %253 = vector.extract_strided_slice %241 {offsets = [0, 64], sizes = [2, 32], strides = [1, 1]} : vector<2x96xf32> to vector<2x32xf32>
    %254 = vector.broadcast %229 : vector<1x32xf32> to vector<2x32xf32>
    %255 = arith.addf %253, %254 : vector<2x32xf32>
    %256 = arith.mulf %250, %255 : vector<2x32xf32>
    %257 = arith.addf %252, %256 : vector<2x32xf32>
    %258 = math.tanh %257 : vector<2x32xf32>
    %cst_81 = arith.constant 1.000000e+00 : f32
    %259 = vector.broadcast %cst_81 : f32 to vector<2x32xf32>
    %260 = arith.subf %259, %251 : vector<2x32xf32>
    %261 = arith.mulf %260, %258 : vector<2x32xf32>
    %262 = arith.mulf %251, %239 : vector<2x32xf32>
    %263 = arith.addf %261, %262 : vector<2x32xf32>
    %c0_82 = arith.constant 0 : index
    %c0_83 = arith.constant 0 : index
    %264 = vector.load %arg9[%c0_82, %c0_83] : memref<16x32xf32, #tpu.memory_space<vmem>>, vector<2x32xf32>
    tpu.vector_store %arg9[%c0_82, %c0_83], %263 {strides = array<i32>} : memref<16x32xf32, #tpu.memory_space<vmem>>, vector<2x32xf32>,
    %265 = vector.extract_strided_slice %237 {offsets = [2, 0], sizes = [2, 96], strides = [1, 1]} : vector<16x96xf32> to vector<2x96xf32>
    %cst_84 = arith.constant dense<0.000000e+00> : vector<2x96xf32>
    %266 = tpu.matmul %263, %227, %cst_84 {dimension_numbers = #tpu.dot_dimension_numbers<[1], [0], [0], [1], [0, 0, 1, 1], [], []>} : vector<2x32xf32>, vector<32x96xf32>, vector<2x96xf32> -> vector<2x96xf32>
    %267 = vector.extract_strided_slice %265 {offsets = [0, 0], sizes = [2, 64], strides = [1, 1]} : vector<2x96xf32> to vector<2x64xf32>
    %268 = vector.extract_strided_slice %266 {offsets = [0, 0], sizes = [2, 64], strides = [1, 1]} : vector<2x96xf32> to vector<2x64xf32>
    %269 = arith.addf %267, %268 : vector<2x64xf32>
    %270 = arith.negf %269 : vector<2x64xf32>
    %271 = math.exp %270 : vector<2x64xf32>
    %cst_85 = arith.constant 1.000000e+00 : f32
    %272 = vector.broadcast %cst_85 : f32 to vector<2x64xf32>
    %273 = arith.addf %272, %271 : vector<2x64xf32>
    %274 = arith.divf %272, %273 : vector<2x64xf32>
    %275 = vector.extract_strided_slice %274 {offsets = [0, 0], sizes = [2, 32], strides = [1, 1]} : vector<2x64xf32> to vector<2x32xf32>
    %276 = vector.extract_strided_slice %274 {offsets = [0, 32], sizes = [2, 32], strides = [1, 1]} : vector<2x64xf32> to vector<2x32xf32>
    %277 = vector.extract_strided_slice %265 {offsets = [0, 64], sizes = [2, 32], strides = [1, 1]} : vector<2x96xf32> to vector<2x32xf32>
    %278 = vector.extract_strided_slice %266 {offsets = [0, 64], sizes = [2, 32], strides = [1, 1]} : vector<2x96xf32> to vector<2x32xf32>
    %279 = vector.broadcast %229 : vector<1x32xf32> to vector<2x32xf32>
    %280 = arith.addf %278, %279 : vector<2x32xf32>
    %281 = arith.mulf %275, %280 : vector<2x32xf32>
    %282 = arith.addf %277, %281 : vector<2x32xf32>
    %283 = math.tanh %282 : vector<2x32xf32>
    %cst_86 = arith.constant 1.000000e+00 : f32
    %284 = vector.broadcast %cst_86 : f32 to vector<2x32xf32>
    %285 = arith.subf %284, %276 : vector<2x32xf32>
    %286 = arith.mulf %285, %283 : vector<2x32xf32>
    %287 = arith.mulf %276, %263 : vector<2x32xf32>
    %288 = arith.addf %286, %287 : vector<2x32xf32>
    %c2_87 = arith.constant 2 : index
    %c0_88 = arith.constant 0 : index
    %289 = vector.load %arg9[%c2_87, %c0_88] : memref<16x32xf32, #tpu.memory_space<vmem>>, vector<2x32xf32>
    tpu.vector_store %arg9[%c2_87, %c0_88], %288 {strides = array<i32>} : memref<16x32xf32, #tpu.memory_space<vmem>>, vector<2x32xf32>,
    %290 = vector.extract_strided_slice %237 {offsets = [4, 0], sizes = [2, 96], strides = [1, 1]} : vector<16x96xf32> to vector<2x96xf32>
    %cst_89 = arith.constant dense<0.000000e+00> : vector<2x96xf32>
    %291 = tpu.matmul %288, %227, %cst_89 {dimension_numbers = #tpu.dot_dimension_numbers<[1], [0], [0], [1], [0, 0, 1, 1], [], []>} : vector<2x32xf32>, vector<32x96xf32>, vector<2x96xf32> -> vector<2x96xf32>
    %292 = vector.extract_strided_slice %290 {offsets = [0, 0], sizes = [2, 64], strides = [1, 1]} : vector<2x96xf32> to vector<2x64xf32>
    %293 = vector.extract_strided_slice %291 {offsets = [0, 0], sizes = [2, 64], strides = [1, 1]} : vector<2x96xf32> to vector<2x64xf32>
    %294 = arith.addf %292, %293 : vector<2x64xf32>
    %295 = arith.negf %294 : vector<2x64xf32>
    %296 = math.exp %295 : vector<2x64xf32>
    %cst_90 = arith.constant 1.000000e+00 : f32
    %297 = vector.broadcast %cst_90 : f32 to vector<2x64xf32>
    %298 = arith.addf %297, %296 : vector<2x64xf32>
    %299 = arith.divf %297, %298 : vector<2x64xf32>
    %300 = vector.extract_strided_slice %299 {offsets = [0, 0], sizes = [2, 32], strides = [1, 1]} : vector<2x64xf32> to vector<2x32xf32>
    %301 = vector.extract_strided_slice %299 {offsets = [0, 32], sizes = [2, 32], strides = [1, 1]} : vector<2x64xf32> to vector<2x32xf32>
    %302 = vector.extract_strided_slice %290 {offsets = [0, 64], sizes = [2, 32], strides = [1, 1]} : vector<2x96xf32> to vector<2x32xf32>
    %303 = vector.extract_strided_slice %291 {offsets = [0, 64], sizes = [2, 32], strides = [1, 1]} : vector<2x96xf32> to vector<2x32xf32>
    %304 = vector.broadcast %229 : vector<1x32xf32> to vector<2x32xf32>
    %305 = arith.addf %303, %304 : vector<2x32xf32>
    %306 = arith.mulf %300, %305 : vector<2x32xf32>
    %307 = arith.addf %302, %306 : vector<2x32xf32>
    %308 = math.tanh %307 : vector<2x32xf32>
    %cst_91 = arith.constant 1.000000e+00 : f32
    %309 = vector.broadcast %cst_91 : f32 to vector<2x32xf32>
    %310 = arith.subf %309, %301 : vector<2x32xf32>
    %311 = arith.mulf %310, %308 : vector<2x32xf32>
    %312 = arith.mulf %301, %288 : vector<2x32xf32>
    %313 = arith.addf %311, %312 : vector<2x32xf32>
    %c4_92 = arith.constant 4 : index
    %c0_93 = arith.constant 0 : index
    %314 = vector.load %arg9[%c4_92, %c0_93] : memref<16x32xf32, #tpu.memory_space<vmem>>, vector<2x32xf32>
    tpu.vector_store %arg9[%c4_92, %c0_93], %313 {strides = array<i32>} : memref<16x32xf32, #tpu.memory_space<vmem>>, vector<2x32xf32>,
    %315 = vector.extract_strided_slice %237 {offsets = [6, 0], sizes = [2, 96], strides = [1, 1]} : vector<16x96xf32> to vector<2x96xf32>
    %cst_94 = arith.constant dense<0.000000e+00> : vector<2x96xf32>
    %316 = tpu.matmul %313, %227, %cst_94 {dimension_numbers = #tpu.dot_dimension_numbers<[1], [0], [0], [1], [0, 0, 1, 1], [], []>} : vector<2x32xf32>, vector<32x96xf32>, vector<2x96xf32> -> vector<2x96xf32>
    %317 = vector.extract_strided_slice %315 {offsets = [0, 0], sizes = [2, 64], strides = [1, 1]} : vector<2x96xf32> to vector<2x64xf32>
    %318 = vector.extract_strided_slice %316 {offsets = [0, 0], sizes = [2, 64], strides = [1, 1]} : vector<2x96xf32> to vector<2x64xf32>
    %319 = arith.addf %317, %318 : vector<2x64xf32>
    %320 = arith.negf %319 : vector<2x64xf32>
    %321 = math.exp %320 : vector<2x64xf32>
    %cst_95 = arith.constant 1.000000e+00 : f32
    %322 = vector.broadcast %cst_95 : f32 to vector<2x64xf32>
    %323 = arith.addf %322, %321 : vector<2x64xf32>
    %324 = arith.divf %322, %323 : vector<2x64xf32>
    %325 = vector.extract_strided_slice %324 {offsets = [0, 0], sizes = [2, 32], strides = [1, 1]} : vector<2x64xf32> to vector<2x32xf32>
    %326 = vector.extract_strided_slice %324 {offsets = [0, 32], sizes = [2, 32], strides = [1, 1]} : vector<2x64xf32> to vector<2x32xf32>
    %327 = vector.extract_strided_slice %315 {offsets = [0, 64], sizes = [2, 32], strides = [1, 1]} : vector<2x96xf32> to vector<2x32xf32>
    %328 = vector.extract_strided_slice %316 {offsets = [0, 64], sizes = [2, 32], strides = [1, 1]} : vector<2x96xf32> to vector<2x32xf32>
    %329 = vector.broadcast %229 : vector<1x32xf32> to vector<2x32xf32>
    %330 = arith.addf %328, %329 : vector<2x32xf32>
    %331 = arith.mulf %325, %330 : vector<2x32xf32>
    %332 = arith.addf %327, %331 : vector<2x32xf32>
    %333 = math.tanh %332 : vector<2x32xf32>
    %cst_96 = arith.constant 1.000000e+00 : f32
    %334 = vector.broadcast %cst_96 : f32 to vector<2x32xf32>
    %335 = arith.subf %334, %326 : vector<2x32xf32>
    %336 = arith.mulf %335, %333 : vector<2x32xf32>
    %337 = arith.mulf %326, %313 : vector<2x32xf32>
    %338 = arith.addf %336, %337 : vector<2x32xf32>
    %c6_97 = arith.constant 6 : index
    %c0_98 = arith.constant 0 : index
    %339 = vector.load %arg9[%c6_97, %c0_98] : memref<16x32xf32, #tpu.memory_space<vmem>>, vector<2x32xf32>
    tpu.vector_store %arg9[%c6_97, %c0_98], %338 {strides = array<i32>} : memref<16x32xf32, #tpu.memory_space<vmem>>, vector<2x32xf32>,
    %340 = vector.extract_strided_slice %237 {offsets = [8, 0], sizes = [2, 96], strides = [1, 1]} : vector<16x96xf32> to vector<2x96xf32>
    %cst_99 = arith.constant dense<0.000000e+00> : vector<2x96xf32>
    %341 = tpu.matmul %338, %227, %cst_99 {dimension_numbers = #tpu.dot_dimension_numbers<[1], [0], [0], [1], [0, 0, 1, 1], [], []>} : vector<2x32xf32>, vector<32x96xf32>, vector<2x96xf32> -> vector<2x96xf32>
    %342 = vector.extract_strided_slice %340 {offsets = [0, 0], sizes = [2, 64], strides = [1, 1]} : vector<2x96xf32> to vector<2x64xf32>
    %343 = vector.extract_strided_slice %341 {offsets = [0, 0], sizes = [2, 64], strides = [1, 1]} : vector<2x96xf32> to vector<2x64xf32>
    %344 = arith.addf %342, %343 : vector<2x64xf32>
    %345 = arith.negf %344 : vector<2x64xf32>
    %346 = math.exp %345 : vector<2x64xf32>
    %cst_100 = arith.constant 1.000000e+00 : f32
    %347 = vector.broadcast %cst_100 : f32 to vector<2x64xf32>
    %348 = arith.addf %347, %346 : vector<2x64xf32>
    %349 = arith.divf %347, %348 : vector<2x64xf32>
    %350 = vector.extract_strided_slice %349 {offsets = [0, 0], sizes = [2, 32], strides = [1, 1]} : vector<2x64xf32> to vector<2x32xf32>
    %351 = vector.extract_strided_slice %349 {offsets = [0, 32], sizes = [2, 32], strides = [1, 1]} : vector<2x64xf32> to vector<2x32xf32>
    %352 = vector.extract_strided_slice %340 {offsets = [0, 64], sizes = [2, 32], strides = [1, 1]} : vector<2x96xf32> to vector<2x32xf32>
    %353 = vector.extract_strided_slice %341 {offsets = [0, 64], sizes = [2, 32], strides = [1, 1]} : vector<2x96xf32> to vector<2x32xf32>
    %354 = vector.broadcast %229 : vector<1x32xf32> to vector<2x32xf32>
    %355 = arith.addf %353, %354 : vector<2x32xf32>
    %356 = arith.mulf %350, %355 : vector<2x32xf32>
    %357 = arith.addf %352, %356 : vector<2x32xf32>
    %358 = math.tanh %357 : vector<2x32xf32>
    %cst_101 = arith.constant 1.000000e+00 : f32
    %359 = vector.broadcast %cst_101 : f32 to vector<2x32xf32>
    %360 = arith.subf %359, %351 : vector<2x32xf32>
    %361 = arith.mulf %360, %358 : vector<2x32xf32>
    %362 = arith.mulf %351, %338 : vector<2x32xf32>
    %363 = arith.addf %361, %362 : vector<2x32xf32>
    %c8_102 = arith.constant 8 : index
    %c0_103 = arith.constant 0 : index
    %364 = vector.load %arg9[%c8_102, %c0_103] : memref<16x32xf32, #tpu.memory_space<vmem>>, vector<2x32xf32>
    tpu.vector_store %arg9[%c8_102, %c0_103], %363 {strides = array<i32>} : memref<16x32xf32, #tpu.memory_space<vmem>>, vector<2x32xf32>,
    %365 = vector.extract_strided_slice %237 {offsets = [10, 0], sizes = [2, 96], strides = [1, 1]} : vector<16x96xf32> to vector<2x96xf32>
    %cst_104 = arith.constant dense<0.000000e+00> : vector<2x96xf32>
    %366 = tpu.matmul %363, %227, %cst_104 {dimension_numbers = #tpu.dot_dimension_numbers<[1], [0], [0], [1], [0, 0, 1, 1], [], []>} : vector<2x32xf32>, vector<32x96xf32>, vector<2x96xf32> -> vector<2x96xf32>
    %367 = vector.extract_strided_slice %365 {offsets = [0, 0], sizes = [2, 64], strides = [1, 1]} : vector<2x96xf32> to vector<2x64xf32>
    %368 = vector.extract_strided_slice %366 {offsets = [0, 0], sizes = [2, 64], strides = [1, 1]} : vector<2x96xf32> to vector<2x64xf32>
    %369 = arith.addf %367, %368 : vector<2x64xf32>
    %370 = arith.negf %369 : vector<2x64xf32>
    %371 = math.exp %370 : vector<2x64xf32>
    %cst_105 = arith.constant 1.000000e+00 : f32
    %372 = vector.broadcast %cst_105 : f32 to vector<2x64xf32>
    %373 = arith.addf %372, %371 : vector<2x64xf32>
    %374 = arith.divf %372, %373 : vector<2x64xf32>
    %375 = vector.extract_strided_slice %374 {offsets = [0, 0], sizes = [2, 32], strides = [1, 1]} : vector<2x64xf32> to vector<2x32xf32>
    %376 = vector.extract_strided_slice %374 {offsets = [0, 32], sizes = [2, 32], strides = [1, 1]} : vector<2x64xf32> to vector<2x32xf32>
    %377 = vector.extract_strided_slice %365 {offsets = [0, 64], sizes = [2, 32], strides = [1, 1]} : vector<2x96xf32> to vector<2x32xf32>
    %378 = vector.extract_strided_slice %366 {offsets = [0, 64], sizes = [2, 32], strides = [1, 1]} : vector<2x96xf32> to vector<2x32xf32>
    %379 = vector.broadcast %229 : vector<1x32xf32> to vector<2x32xf32>
    %380 = arith.addf %378, %379 : vector<2x32xf32>
    %381 = arith.mulf %375, %380 : vector<2x32xf32>
    %382 = arith.addf %377, %381 : vector<2x32xf32>
    %383 = math.tanh %382 : vector<2x32xf32>
    %cst_106 = arith.constant 1.000000e+00 : f32
    %384 = vector.broadcast %cst_106 : f32 to vector<2x32xf32>
    %385 = arith.subf %384, %376 : vector<2x32xf32>
    %386 = arith.mulf %385, %383 : vector<2x32xf32>
    %387 = arith.mulf %376, %363 : vector<2x32xf32>
    %388 = arith.addf %386, %387 : vector<2x32xf32>
    %c10_107 = arith.constant 10 : index
    %c0_108 = arith.constant 0 : index
    %389 = vector.load %arg9[%c10_107, %c0_108] : memref<16x32xf32, #tpu.memory_space<vmem>>, vector<2x32xf32>
    tpu.vector_store %arg9[%c10_107, %c0_108], %388 {strides = array<i32>} : memref<16x32xf32, #tpu.memory_space<vmem>>, vector<2x32xf32>,
    %390 = vector.extract_strided_slice %237 {offsets = [12, 0], sizes = [2, 96], strides = [1, 1]} : vector<16x96xf32> to vector<2x96xf32>
    %cst_109 = arith.constant dense<0.000000e+00> : vector<2x96xf32>
    %391 = tpu.matmul %388, %227, %cst_109 {dimension_numbers = #tpu.dot_dimension_numbers<[1], [0], [0], [1], [0, 0, 1, 1], [], []>} : vector<2x32xf32>, vector<32x96xf32>, vector<2x96xf32> -> vector<2x96xf32>
    %392 = vector.extract_strided_slice %390 {offsets = [0, 0], sizes = [2, 64], strides = [1, 1]} : vector<2x96xf32> to vector<2x64xf32>
    %393 = vector.extract_strided_slice %391 {offsets = [0, 0], sizes = [2, 64], strides = [1, 1]} : vector<2x96xf32> to vector<2x64xf32>
    %394 = arith.addf %392, %393 : vector<2x64xf32>
    %395 = arith.negf %394 : vector<2x64xf32>
    %396 = math.exp %395 : vector<2x64xf32>
    %cst_110 = arith.constant 1.000000e+00 : f32
    %397 = vector.broadcast %cst_110 : f32 to vector<2x64xf32>
    %398 = arith.addf %397, %396 : vector<2x64xf32>
    %399 = arith.divf %397, %398 : vector<2x64xf32>
    %400 = vector.extract_strided_slice %399 {offsets = [0, 0], sizes = [2, 32], strides = [1, 1]} : vector<2x64xf32> to vector<2x32xf32>
    %401 = vector.extract_strided_slice %399 {offsets = [0, 32], sizes = [2, 32], strides = [1, 1]} : vector<2x64xf32> to vector<2x32xf32>
    %402 = vector.extract_strided_slice %390 {offsets = [0, 64], sizes = [2, 32], strides = [1, 1]} : vector<2x96xf32> to vector<2x32xf32>
    %403 = vector.extract_strided_slice %391 {offsets = [0, 64], sizes = [2, 32], strides = [1, 1]} : vector<2x96xf32> to vector<2x32xf32>
    %404 = vector.broadcast %229 : vector<1x32xf32> to vector<2x32xf32>
    %405 = arith.addf %403, %404 : vector<2x32xf32>
    %406 = arith.mulf %400, %405 : vector<2x32xf32>
    %407 = arith.addf %402, %406 : vector<2x32xf32>
    %408 = math.tanh %407 : vector<2x32xf32>
    %cst_111 = arith.constant 1.000000e+00 : f32
    %409 = vector.broadcast %cst_111 : f32 to vector<2x32xf32>
    %410 = arith.subf %409, %401 : vector<2x32xf32>
    %411 = arith.mulf %410, %408 : vector<2x32xf32>
    %412 = arith.mulf %401, %388 : vector<2x32xf32>
    %413 = arith.addf %411, %412 : vector<2x32xf32>
    %c12_112 = arith.constant 12 : index
    %c0_113 = arith.constant 0 : index
    %414 = vector.load %arg9[%c12_112, %c0_113] : memref<16x32xf32, #tpu.memory_space<vmem>>, vector<2x32xf32>
    tpu.vector_store %arg9[%c12_112, %c0_113], %413 {strides = array<i32>} : memref<16x32xf32, #tpu.memory_space<vmem>>, vector<2x32xf32>,
    %415 = vector.extract_strided_slice %237 {offsets = [14, 0], sizes = [2, 96], strides = [1, 1]} : vector<16x96xf32> to vector<2x96xf32>
    %cst_114 = arith.constant dense<0.000000e+00> : vector<2x96xf32>
    %416 = tpu.matmul %413, %227, %cst_114 {dimension_numbers = #tpu.dot_dimension_numbers<[1], [0], [0], [1], [0, 0, 1, 1], [], []>} : vector<2x32xf32>, vector<32x96xf32>, vector<2x96xf32> -> vector<2x96xf32>
    %417 = vector.extract_strided_slice %415 {offsets = [0, 0], sizes = [2, 64], strides = [1, 1]} : vector<2x96xf32> to vector<2x64xf32>
    %418 = vector.extract_strided_slice %416 {offsets = [0, 0], sizes = [2, 64], strides = [1, 1]} : vector<2x96xf32> to vector<2x64xf32>
    %419 = arith.addf %417, %418 : vector<2x64xf32>
    %420 = arith.negf %419 : vector<2x64xf32>
    %421 = math.exp %420 : vector<2x64xf32>
    %cst_115 = arith.constant 1.000000e+00 : f32
    %422 = vector.broadcast %cst_115 : f32 to vector<2x64xf32>
    %423 = arith.addf %422, %421 : vector<2x64xf32>
    %424 = arith.divf %422, %423 : vector<2x64xf32>
    %425 = vector.extract_strided_slice %424 {offsets = [0, 0], sizes = [2, 32], strides = [1, 1]} : vector<2x64xf32> to vector<2x32xf32>
    %426 = vector.extract_strided_slice %424 {offsets = [0, 32], sizes = [2, 32], strides = [1, 1]} : vector<2x64xf32> to vector<2x32xf32>
    %427 = vector.extract_strided_slice %415 {offsets = [0, 64], sizes = [2, 32], strides = [1, 1]} : vector<2x96xf32> to vector<2x32xf32>
    %428 = vector.extract_strided_slice %416 {offsets = [0, 64], sizes = [2, 32], strides = [1, 1]} : vector<2x96xf32> to vector<2x32xf32>
    %429 = vector.broadcast %229 : vector<1x32xf32> to vector<2x32xf32>
    %430 = arith.addf %428, %429 : vector<2x32xf32>
    %431 = arith.mulf %425, %430 : vector<2x32xf32>
    %432 = arith.addf %427, %431 : vector<2x32xf32>
    %433 = math.tanh %432 : vector<2x32xf32>
    %cst_116 = arith.constant 1.000000e+00 : f32
    %434 = vector.broadcast %cst_116 : f32 to vector<2x32xf32>
    %435 = arith.subf %434, %426 : vector<2x32xf32>
    %436 = arith.mulf %435, %433 : vector<2x32xf32>
    %437 = arith.mulf %426, %413 : vector<2x32xf32>
    %438 = arith.addf %436, %437 : vector<2x32xf32>
    %c14_117 = arith.constant 14 : index
    %c0_118 = arith.constant 0 : index
    %439 = vector.load %arg9[%c14_117, %c0_118] : memref<16x32xf32, #tpu.memory_space<vmem>>, vector<2x32xf32>
    tpu.vector_store %arg9[%c14_117, %c0_118], %438 {strides = array<i32>} : memref<16x32xf32, #tpu.memory_space<vmem>>, vector<2x32xf32>,
    %c1_119 = arith.constant 1 : index
    %c0_120 = arith.constant 0 : index
    %c0_121 = arith.constant 0 : index
    %440 = vector.load %arg8[%c1_119, %c0_120, %c0_121] : memref<2x2x32xf32, #tpu.memory_space<vmem>>, vector<1x2x32xf32>
    %441 = vector.shape_cast %440 : vector<1x2x32xf32> to vector<2x32xf32>
    %442 = vector.shape_cast %438 : vector<2x32xf32> to vector<1x2x32xf32>
    tpu.vector_store %arg8[%c1_119, %c0_120, %c0_121], %442 {strides = array<i32>} : memref<2x2x32xf32, #tpu.memory_space<vmem>>, vector<1x2x32xf32>,
    return
  }
}

</mosaic_0001>

<bundles_post_ra>
// kernel: tpu_custom_call.1
= control target key start
LH: loop header
LB: loop body
LE: loop exit
PB: predicated region body
PF: predicated region fallthrough
CT: control target
= control target key end

     0   :  { %13 = vsyncpa [#allocation4], 0  ;;  %s3272_s0 = inlined_call_operand.vmem [shape: f32[16,4], index: 0, kind: input, shape index: {}]   ;;  %s3273_s1 = inlined_call_operand.vmem [shape: f32[2,2,32], index: 1, kind: input, shape index: {}]   ;;  %s3274_s2 = inlined_call_operand.vmem [shape: f32[4,32], index: 2, kind: input, shape index: {}]   ;;  %s3275_s3 = inlined_call_operand.vmem [shape: f32[1,32], index: 3, kind: input, shape index: {}]   ;;  %s3276_s4 = inlined_call_operand.hbm [shape: f32[2,32,96], index: 4, kind: input, shape index: {}]   ;;  %s3277_s5 = inlined_call_operand.hbm [shape: f32[2,32,96], index: 5, kind: input, shape index: {}]   ;;  %s3278_s6 = inlined_call_operand.vmem [shape: f32[2,1,96], index: 6, kind: input, shape index: {}]   ;;  %s3279_s7 = inlined_call_operand.vmem [shape: f32[2,1,32], index: 7, kind: input, shape index: {}]   ;;  %s3280_s8 = inlined_call_operand.hbm [shape: f32[2,2,32], index: 8, kind: output, shape index: {}]  }
   0x1   :  { %14 = vsyncpa [#allocation7], 0 }
   0x2   :  { %15 = vsyncpa [#allocation5], 0  ;;  %s2818_s27 = smov [#allocation3]   ;;  %s2746_s9 = scalar_lea.hbm %s3276_s4, 1024 }
   0x3   :  { %s29_s28 = sshll.u32 %s2818_s27, 4  ;;  %p2747_p0 = scmp.ne.s32.totalorder %s3276_s4, %s2746_s9  ;;  %s30_s28 = int_to_ptr.vmem [resolvable:$true] %s29_s28 }
   0x4   :  { %p2750_p1 = scmp.lt.u32.totalorder %s2746_s9, %s3276_s4 }
   0x6   :  { %p2752_p2 = pnand %p2750_p1, %p2747_p0 }
   0x8   :  { %2755 = shalt.err (!%p2752_p2)
}
   0x9   :  { %s2756_s14 = scalar_lea.vmem %s30_s28, 1024  ;;  %p2761_p4 = scmp.lt.s32.totalorder %s30_s28, %s30_s28 }
   0xa   :  { %p2757_p3 = scmp.ne.s32.totalorder %s30_s28, %s2756_s14  ;;  %p2762_p5 = scmp.lt.s32.totalorder %s2756_s14, %s2756_s14 }
   0xc   :  { %p2763_p6 = por %p2762_p5, %p2761_p4 }
   0xe   :  { %p2764_p7 = pnand %p2763_p6, %p2757_p3 }
  0x10   :  { %2767 = shalt.err (!%p2764_p7)
}
  0x11   :  { %s2819_s15 = smov 128   ;;  %s2820_s16 = smov 8  }
  0x12   :  { %35 = dma.hbm_to_vmem [thread:$0]  %s3276_s4, 1024, %s30_s28, [#allocation4], %s2819_s15, %s2819_s15, %s2820_s16  }
  0x13   :  { %s2821_s19 = smov [#allocation6]   ;;  %s2768_s23 = scalar_lea.hbm %s3277_s5, 1024 }
  0x14   :  { %s41_s20 = sshll.u32 %s2821_s19, 4  ;;  %p2769_p8 = scmp.ne.s32.totalorder %s3277_s5, %s2768_s23  ;;  %s42_s20 = int_to_ptr.vmem [resolvable:$true] %s41_s20 }
  0x15   :  { %p2772_p9 = scmp.lt.u32.totalorder %s2768_s23, %s3277_s5 }
  0x17   :  { %p2774_p10 = pnand %p2772_p9, %p2769_p8 }
  0x19   :  { %2777 = shalt.err (!%p2774_p10)
}
  0x1a   :  { %s2778_s29 = scalar_lea.vmem %s42_s20, 1024  ;;  %p2783_p12 = scmp.lt.s32.totalorder %s42_s20, %s42_s20 }
  0x1b   :  { %p2779_p11 = scmp.ne.s32.totalorder %s42_s20, %s2778_s29  ;;  %p2784_p13 = scmp.lt.s32.totalorder %s2778_s29, %s2778_s29 }
  0x1d   :  { %p2785_p0 = por %p2784_p13, %p2783_p12 }
  0x1f   :  { %p2786_p1 = pnand %p2785_p0, %p2779_p11 }
  0x21   :  { %2789 = shalt.err (!%p2786_p1)
}
  0x22   :  { %47 = dma.hbm_to_vmem [thread:$0]  %s3277_s5, 1024, %s42_s20, [#allocation7], %s2819_s15, %s2819_s15, %s2820_s16  }
  0x23   :  { %2812 = dma.done.wait [#allocation4], 1024  }
  0x24   :  { %2813 = vsyncadd [#allocation4], 4294966272 }
  0x25   :  { %2814 = dma.done.wait [#allocation7], 1024  }
  0x26   :  { %2815 = vsyncadd [#allocation7], 4294966272  ;;  %vm75_vm0 = vcmask 1043456   ;;  %vm68_vm1 = vcmask 31744   ;;  %v60_v0 = vld [vmem:[%s3274_s2] sm:$0xf] }
  0x27   :  { %v58_v1 = vld [vmem:[%s3272_s0] sm:$0xff]  ;;  %v59_v2 = vld [vmem:[%s3272_s0 + $0x8] sm:$0xff]  ;;  %2323 = vmatprep.subr.msk.mxu0 %vm75_vm0, %v60_v0  ;;  %v159_v3 = vld [vmem:[#allocation6] sm:$0xff]  ;;  %v2822_v8 = vmov 0.0|0.0   ;;  %vm2823_vm2 = vmmov 0   ;;  %v2824_v10 = vmov 0.0  }
  0x28   :  { %2325 = vmatprep.mubr.msk.f32.mxu0 %vm68_vm1, %v58_v1  ;;  %v160_v4 = vld [vmem:[#allocation6 + $0x8] sm:$0xff]  ;;  %v161_v5 = vld [vmem:[#allocation6 + $0x10] sm:$0xff]  ;;  %2324 = vmatpush3.msk.msra.mxu0 %vm75_vm0, %v60_v0  ;;  %v162_v7 = vld [vmem:[#allocation6 + $0x18] sm:$0xff]  ;;  %vm156_vm3 = vcmask 261120   ;;  %s2825_s15 = smov 64   ;;  %s2827_s20 = smov 96  }
  0x29   :  { %v2908_v6 = vpack.c.bf16 %v160_v4, %v159_v3  ;;  %2326 = vmatmul.mubr.msk.f32.vlgmr.msra.gmra.mrb[0].mxu0 %vm68_vm1, %v59_v2  ;;  %2534 = vmatprep.subr.bf16.mxu0 %v2822_v8  ;;  %v2912_v9 = vpack.c.bf16 %v162_v7, %v161_v5  ;;  %v258_v11 = vld [vmem:[%s3273_s1] sm:$0x3]  ;;  %v166_v12 = vld [vmem:[#allocation3] sm:$0xff]  ;;  %v167_v13 = vld [vmem:[#allocation3 + $0x8] sm:$0xff]  ;;  %vm374_vm4 = vcmask 254976   ;;  %vm485_vm5 = vcmask 257026  }
  0x2a   :  { %2347 = vmatprep.mubr.msk.f32.mxu0 %vm2823_vm2, %v2824_v10  ;;  %v2526_v14 = vpack.c.bf16 %v167_v13, %v166_v12  ;;  %v168_v15 = vld [vmem:[#allocation3 + $0x10] sm:$0xff]  ;;  %v169_v16 = vld [vmem:[#allocation3 + $0x18] sm:$0xff]  ;;  %vm713_vm6 = vcmask 261126   ;;  %vm599_vm7 = vcmask 259076  }
  0x2b   :  { %2536 = vmatpush3.bf16.msra.mxu0 %v2908_v6  ;;  %v2530_v17 = vpack.c.bf16 %v169_v16, %v168_v15  ;;  %v2190_v18 = vld [vmem:[%s3279_s7] ss:$0 sm:$0xff] }
  0x2c   :  { %2537 = vmatprep.subr.bf16.mxu0 %v2822_v8  ;;  %2527 = vmatprep.subr.bf16.mxu1 %v2526_v14  ;;  %v2181_v19 = vld [vmem:[%s3275_s3] ss:$0 sm:$0xff]  ;;  %s2826_s3 = smov 32  }
  0x2d   :  { %2529 = vmatpush3.bf16.msra.mxu1 %v2526_v14  ;;  %344 = vrot.lane.b32.xlu0 %v2190_v18, %s2825_s15  ;;  %v2185_v32 = vld [vmem:[%s3278_s6] ss:$0 sm:$0xff] }
  0x2e   :  { %2531 = vmatprep.subr.bf16.mxu1 %v2530_v17 }
  0x2f   :  { %2539 = vmatpush3.bf16.msra.mxu0 %v2912_v9 }
  0x30   :  { %2546 = vmatprep.subr.bf16.mxu0 %v2822_v8 }
  0x31   :  { %2533 = vmatpush3.bf16.msra.mxu1 %v2530_v17 }
  0x32   :  { %2348 = vmatmul.mubr.msk.f32.vlgmr.msra.gmra.mrb[2].mxu0 %vm156_vm3, %v258_v11  ;;  %2540 = vmatprep.subr.bf16.mxu1 %v2822_v8 }
  0x33   :  { %2548 = vmatpush3.bf16.msra.mxu0 %v2908_v6  ;;  %2369 = vmatprep.mubr.msk.f32.mxu0 %vm2823_vm2, %v2824_v10 }
  0x34   :  { %2549 = vmatprep.subr.bf16.mxu0 %v2822_v8 }
  0x37   :  { %2551 = vmatpush3.bf16.msra.mxu0 %v2912_v9 }
  0x38   :  { %2558 = vmatprep.subr.bf16.mxu0 %v2822_v8 }
  0x9f   :  { %v2939_v26 = vpop.permute.xlu0 %344 }
  0xfc   :  { %v2327_v20 = vpop.f32.mrb[0].mxu0 }
  0xfd   :  { %v151_v21 = vadd.f32 %v2327_v20, %v2181_v19  ;;  %v145_v22 = vpop.f32.mrb[1].mxu0 }
  0xfe   :  { %v146_v23 = vadd.f32 %v2181_v19, %v145_v22 }
  0xff   :  { %v155_v24 = vmax.f32 %v151_v21, 0.0 }
 0x100   :  { %v154_v25 = vmax.f32 %v146_v23, 0.0 }
 0x101   :  { %158 = vst.msk [vmem:[#allocation2 + $0x8] sm:$0xff] %vm156_vm3, %v155_v24 }
 0x102   :  { %157 = vst.msk [vmem:[#allocation2] sm:$0xff] %vm156_vm3, %v154_v25 }
 0x105   :  { %v328_v27 = vpop.f32.mrb[2].mxu0 }
 0x106   :  { %v347_v28 = vadd.f32 %v2939_v26, %v328_v27  ;;  %v2349_v29 = vpop.f32.mrb[3].mxu0 }
 0x108   :  { %349 = vrot.lane.b32.xlu0 %v347_v28, %s2825_s15  ;;  %v165_v31 = vld [vmem:[#allocation2 + $0x8] sm:$0xff] }
 0x109   :  { %v164_v30 = vld [vmem:[#allocation2] sm:$0xff] }
 0x10a   :  { %2336 = vmatprep.mubr.msk.f32.mxu1 %vm156_vm3, %v164_v30 }
 0x10b   :  { %2337 = vmatmul.mubr.msk.f32.vlgmr.msra.gmra.mrb[0].mxu1 %vm156_vm3, %v165_v31 }
 0x10c   :  { %365 = vrot.lane.b32.xlu0 %v258_v11, %s2826_s3  ;;  %2542 = vmatpush3.bf16.msra.mxu1 %v2908_v6 }
 0x10d   :  { %2358 = vmatprep.mubr.msk.f32.mxu1 %vm2823_vm2, %v2824_v10  ;;  %2543 = vmatprep.subr.bf16.mxu1 %v2822_v8 }
 0x110   :  { %2545 = vmatpush3.bf16.msra.mxu1 %v2912_v9 }
 0x111   :  { %2552 = vmatprep.subr.bf16.mxu1 %v2822_v8 }
 0x17a   :  { %v350_v42 = vpop.permute.xlu0 %349 }
 0x17e   :  { %v366_v47 = vpop.permute.xlu0 %365 }
 0x1de   :  { %v2338_v33 = vpop.f32.mrb[0].mxu1 }
 0x1df   :  { %v2955_v34 = vadd.f32 %v2338_v33, %v2185_v32  ;;  %v249_v35 = vpop.f32.mrb[1].mxu1 }
 0x1e0   :  { %v2957_v36 = vadd.f32 %v2185_v32, %v249_v35 }
 0x1e2   :  { %v332_v37 = vadd.f32 %v328_v27, %v2957_v36 }
 0x1e4   :  { %v2189_v38 = vmul.f32 -1.442695, %v332_v37 }
 0x1e6   :  { %2650 = vpow2.f32 %v2189_v38 }
 0x1f0   :  { %v2651_v39 = vpop.eup %2650 }
 0x1f1   :  { %v336_v40 = vadd.f32 1.0, %v2651_v39 }
 0x1f3   :  { %2652 = vrcp.f32 %v336_v40 }
 0x1fd   :  { %v2653_v41 = vpop.eup %2652 }
 0x1fe   :  { %v352_v43 = vmul.f32 %v2653_v41, %v350_v42  ;;  %v359_v48 = vsub.f32 1.0, %v2653_v41  ;;  %v368_v50 = vmul.f32 %v2653_v41, %v366_v47 }
 0x200   :  { %354 = vrot.lane.b32.xlu1 %v352_v43, %s2825_s15 }
 0x272   :  { %v355_v44 = vpop.permute.xlu1 %354 }
 0x273   :  { %v357_v45 = vadd.f32 %v355_v44, %v2957_v36 }
 0x275   :  { %2654 = vtanh.f32 %v357_v45 }
 0x27f   :  { %v2655_v46 = vpop.eup %2654 }
 0x280   :  { %361 = vrot.lane.b32.xlu1 %v2655_v46, %s2827_s20 }
 0x2f2   :  { %v362_v49 = vpop.permute.xlu1 %361 }
 0x2f3   :  { %v364_v51 = vmul.f32 %v362_v49, %v359_v48 }
 0x2f5   :  { %v369_v52 = vadd.f32 %v368_v50, %v364_v51 }
 0x2f7   :  { %371 = vrot.lane.b32.xlu1 %v369_v52, %s2827_s20  ;;  %v477_v5 = vrot.slane %v369_v52, 6 }
 0x369   :  { %v372_v53 = vpop.permute.xlu1 %371 }
 0x36a   :  { %375 = vst.msk [vmem:[#allocation2] sm:$0x3] %vm374_vm4, %v372_v53  ;;  %2359 = vmatmul.mubr.msk.f32.vlgmr.msra.gmra.mrb[2].mxu1 %vm156_vm3, %v372_v53 }
 0x36b   :  { %2554 = vmatpush3.bf16.msra.mxu1 %v2908_v6  ;;  %2380 = vmatprep.mubr.msk.f32.mxu1 %vm2823_vm2, %v2824_v10 }
 0x36c   :  { %2555 = vmatprep.subr.bf16.mxu1 %v2822_v8 }
 0x36f   :  { %2557 = vmatpush3.bf16.msra.mxu1 %v2912_v9 }
 0x370   :  { %2564 = vmatprep.subr.bf16.mxu1 %v2822_v8 }
 0x43d   :  { %v444_v54 = vpop.f32.mrb[2].mxu1 }
 0x43e   :  { %v458_v55 = vadd.f32 %v444_v54, %v2939_v26  ;;  %v2360_v56 = vpop.f32.mrb[3].mxu1  ;;  %v449_v58 = vrot.slane %v444_v54, 6 }
 0x440   :  { %v460_v57 = vrot.slane %v458_v55, 6  ;;  %v451_v59 = vadd.f32 %v449_v58, %v2957_v36 }
 0x442   :  { %461 = vrot.lane.b32.xlu0 %v460_v57, %s2825_s15  ;;  %v2192_v60 = vmul.f32 -1.442695, %v451_v59 }
 0x444   :  { %2656 = vpow2.f32 %v2192_v60 }
 0x44e   :  { %v2657_v61 = vpop.eup %2656 }
 0x44f   :  { %v455_v62 = vadd.f32 1.0, %v2657_v61 }
 0x451   :  { %2658 = vrcp.f32 %v455_v62 }
 0x45b   :  { %v2659_v63 = vpop.eup %2658 }
 0x45c   :  { %v471_v7 = vsub.f32 1.0, %v2659_v63  ;;  %v479_v13 = vmul.f32 %v2659_v63, %v477_v5 }
 0x4b4   :  { %v462_v0 = vpop.permute.xlu0 %461 }
 0x4b5   :  { %v464_v1 = vmul.f32 %v2659_v63, %v462_v0 }
 0x4b7   :  { %466 = vrot.lane.b32.xlu1 %v464_v1, %s2825_s15 }
 0x529   :  { %v467_v2 = vpop.permute.xlu1 %466 }
 0x52a   :  { %v469_v3 = vadd.f32 %v467_v2, %v2957_v36 }
 0x52c   :  { %2660 = vtanh.f32 %v469_v3 }
 0x536   :  { %v2661_v4 = vpop.eup %2660 }
 0x537   :  { %473 = vrot.lane.b32.xlu0 %v2661_v4, %s2827_s20 }
 0x5a9   :  { %v474_v11 = vpop.permute.xlu0 %473 }
 0x5aa   :  { %v476_v12 = vmul.f32 %v474_v11, %v471_v7 }
 0x5ac   :  { %v2978_v14 = vadd.f32 %v479_v13, %v476_v12 }
 0x5ae   :  { %v487_v15 = vrot.slane %v2978_v14, 2  ;;  %v591_v35 = vrot.slane %v2978_v14, 6 }
 0x5b0   :  { %488 = vrot.lane.b32.xlu1 %v487_v15, %s2827_s20 }
 0x622   :  { %v489_v16 = vpop.permute.xlu1 %488 }
 0x623   :  { %2370 = vmatmul.mubr.msk.f32.vlgmr.msra.gmra.mrb[4].mxu0 %vm156_vm3, %v489_v16 }
 0x624   :  { %2560 = vmatpush3.bf16.msra.mxu0 %v2908_v6  ;;  %2391 = vmatprep.mubr.msk.f32.mxu0 %vm2823_vm2, %v2824_v10 }
 0x625   :  { %2561 = vmatprep.subr.bf16.mxu0 %v2822_v8 }
 0x628   :  { %2563 = vmatpush3.bf16.msra.mxu0 %v2912_v9 }
 0x629   :  { %2570 = vmatprep.subr.bf16.mxu0 %v2822_v8 }
 0x6f6   :  { %v558_v17 = vpop.f32.mrb[4].mxu0 }
 0x6f7   :  { %v572_v18 = vadd.f32 %v558_v17, %v2939_v26  ;;  %v2371_v19 = vpop.f32.mrb[5].mxu0  ;;  %v563_v21 = vrot.slane %v558_v17, 4 }
 0x6f9   :  { %v574_v20 = vrot.slane %v572_v18, 4  ;;  %v565_v22 = vadd.f32 %v563_v21, %v2957_v36 }
 0x6fb   :  { %575 = vrot.lane.b32.xlu0 %v574_v20, %s2825_s15  ;;  %v2194_v23 = vmul.f32 -1.442695, %v565_v22 }
 0x6fd   :  { %2662 = vpow2.f32 %v2194_v23 }
 0x707   :  { %v2663_v24 = vpop.eup %2662 }
 0x708   :  { %v569_v25 = vadd.f32 1.0, %v2663_v24 }
 0x70a   :  { %2664 = vrcp.f32 %v569_v25 }
 0x714   :  { %v2665_v27 = vpop.eup %2664 }
 0x715   :  { %v585_v33 = vsub.f32 1.0, %v2665_v27  ;;  %v593_v38 = vmul.f32 %v2665_v27, %v591_v35 }
 0x76d   :  { %v576_v28 = vpop.permute.xlu0 %575 }
 0x76e   :  { %v578_v29 = vmul.f32 %v2665_v27, %v576_v28 }
 0x770   :  { %580 = vrot.lane.b32.xlu1 %v578_v29, %s2825_s15 }
 0x7e2   :  { %v581_v30 = vpop.permute.xlu1 %580 }
 0x7e3   :  { %v583_v31 = vadd.f32 %v581_v30, %v2957_v36 }
 0x7e5   :  { %2666 = vtanh.f32 %v583_v31 }
 0x7ef   :  { %v2667_v32 = vpop.eup %2666 }
 0x7f0   :  { %587 = vrot.lane.b32.xlu0 %v2667_v32, %s2827_s20 }
 0x862   :  { %v588_v37 = vpop.permute.xlu0 %587 }
 0x863   :  { %v590_v39 = vmul.f32 %v588_v37, %v585_v33 }
 0x865   :  { %v2996_v40 = vadd.f32 %v593_v38, %v590_v39 }
 0x867   :  { %v601_v41 = vrot.slane %v2996_v40, 4  ;;  %v705_v59 = vrot.slane %v2996_v40, 6 }
 0x869   :  { %602 = vrot.lane.b32.xlu1 %v601_v41, %s2827_s20 }
 0x8db   :  { %v603_v42 = vpop.permute.xlu1 %602 }
 0x8dc   :  { %2381 = vmatmul.mubr.msk.f32.vlgmr.msra.gmra.mrb[4].mxu1 %vm156_vm3, %v603_v42 }
 0x8dd   :  { %2566 = vmatpush3.bf16.msra.mxu1 %v2908_v6  ;;  %2402 = vmatprep.mubr.msk.f32.mxu1 %vm2823_vm2, %v2824_v10 }
 0x8de   :  { %2567 = vmatprep.subr.bf16.mxu1 %v2822_v8 }
 0x8e1   :  { %2569 = vmatpush3.bf16.msra.mxu1 %v2912_v9 }
 0x8e2   :  { %2576 = vmatprep.subr.bf16.mxu1 %v2822_v8 }
 0x9af   :  { %v672_v43 = vpop.f32.mrb[4].mxu1 }
 0x9b0   :  { %v686_v44 = vadd.f32 %v672_v43, %v2939_v26  ;;  %v2382_v45 = vpop.f32.mrb[5].mxu1  ;;  %v677_v47 = vrot.slane %v672_v43, 2 }
 0x9b2   :  { %v688_v46 = vrot.slane %v686_v44, 2  ;;  %v679_v48 = vadd.f32 %v677_v47, %v2957_v36 }
 0x9b4   :  { %689 = vrot.lane.b32.xlu0 %v688_v46, %s2825_s15  ;;  %v2196_v49 = vmul.f32 -1.442695, %v679_v48 }
 0x9b6   :  { %2668 = vpow2.f32 %v2196_v49 }
 0x9c0   :  { %v2669_v50 = vpop.eup %2668 }
 0x9c1   :  { %v683_v51 = vadd.f32 1.0, %v2669_v50 }
 0x9c3   :  { %2670 = vrcp.f32 %v683_v51 }
 0x9cd   :  { %v2671_v52 = vpop.eup %2670 }
 0x9ce   :  { %v699_v58 = vsub.f32 1.0, %v2671_v52  ;;  %v707_v61 = vmul.f32 %v2671_v52, %v705_v59 }
 0xa26   :  { %v690_v53 = vpop.permute.xlu0 %689 }
 0xa27   :  { %v692_v54 = vmul.f32 %v2671_v52, %v690_v53 }
 0xa29   :  { %694 = vrot.lane.b32.xlu1 %v692_v54, %s2825_s15 }
 0xa9b   :  { %v695_v55 = vpop.permute.xlu1 %694 }
 0xa9c   :  { %v697_v56 = vadd.f32 %v695_v55, %v2957_v36 }
 0xa9e   :  { %2672 = vtanh.f32 %v697_v56 }
 0xaa8   :  { %v2673_v57 = vpop.eup %2672 }
 0xaa9   :  { %701 = vrot.lane.b32.xlu0 %v2673_v57, %s2827_s20 }
 0xb1b   :  { %v702_v60 = vpop.permute.xlu0 %701 }
 0xb1c   :  { %v704_v62 = vmul.f32 %v702_v60, %v699_v58 }
 0xb1e   :  { %v3014_v63 = vadd.f32 %v707_v61, %v704_v62 }
 0xb20   :  { %v715_v0 = vrot.slane %v3014_v63, 6 }
 0xb22   :  { %716 = vrot.lane.b32.xlu1 %v715_v0, %s2827_s20 }
 0xb94   :  { %v717_v1 = vpop.permute.xlu1 %716 }
 0xb95   :  { %2392 = vmatmul.mubr.msk.f32.vlgmr.msra.gmra.mrb[6].mxu0 %vm156_vm3, %v717_v1 }
 0xb96   :  { %2572 = vmatpush3.bf16.msra.mxu0 %v2908_v6  ;;  %2413 = vmatprep.mubr.msk.f32.mxu0 %vm2823_vm2, %v2824_v10 }
 0xb97   :  { %2573 = vmatprep.subr.bf16.mxu0 %v2822_v8 }
 0xb9a   :  { %2575 = vmatpush3.bf16.msra.mxu0 %v2912_v9 }
 0xc68   :  { %v786_v36 = vpop.f32.mrb[6].mxu0 }
 0xc69   :  { %v797_v2 = vadd.f32 %v786_v36, %v2939_v26  ;;  %v2393_v3 = vpop.f32.mrb[7].mxu0  ;;  %v790_v4 = vadd.f32 %v786_v36, %v2955_v34 }
 0xc6b   :  { %799 = vrot.lane.b32.xlu0 %v797_v2, %s2825_s15  ;;  %v2198_v5 = vmul.f32 -1.442695, %v790_v4 }
 0xc6d   :  { %2674 = vpow2.f32 %v2198_v5 }
 0xc77   :  { %v2675_v7 = vpop.eup %2674 }
 0xc78   :  { %v794_v11 = vadd.f32 1.0, %v2675_v7 }
 0xc7a   :  { %2676 = vrcp.f32 %v794_v11 }
 0xc84   :  { %v2677_v12 = vpop.eup %2676 }
 0xc85   :  { %v809_v19 = vsub.f32 1.0, %v2677_v12  ;;  %v816_v21 = vmul.f32 %v2677_v12, %v715_v0 }
 0xcdd   :  { %v800_v13 = vpop.permute.xlu0 %799 }
 0xcde   :  { %v802_v15 = vmul.f32 %v2677_v12, %v800_v13 }
 0xce0   :  { %804 = vrot.lane.b32.xlu1 %v802_v15, %s2825_s15 }
 0xd52   :  { %v805_v16 = vpop.permute.xlu1 %804 }
 0xd53   :  { %v807_v17 = vadd.f32 %v805_v16, %v2955_v34 }
 0xd55   :  { %2678 = vtanh.f32 %v807_v17 }
 0xd5f   :  { %v2679_v18 = vpop.eup %2678 }
 0xd60   :  { %811 = vrot.lane.b32.xlu0 %v2679_v18, %s2827_s20 }
 0xdd2   :  { %v812_v20 = vpop.permute.xlu0 %811 }
 0xdd3   :  { %v814_v22 = vmul.f32 %v812_v20, %v809_v19 }
 0xdd5   :  { %v817_v23 = vadd.f32 %v816_v21, %v814_v22 }
 0xdd7   :  { %819 = vrot.lane.b32.xlu1 %v817_v23, %s2827_s20  ;;  %v924_v42 = vrot.slane %v817_v23, 6 }
 0xe49   :  { %v820_v24 = vpop.permute.xlu1 %819 }
 0xe4a   :  { %822 = vst.msk [vmem:[#allocation2 + $0x8] sm:$0x3] %vm374_vm4, %v820_v24  ;;  %2403 = vmatmul.mubr.msk.f32.vlgmr.msra.gmra.mrb[6].mxu1 %vm156_vm3, %v820_v24 }
 0xe4b   :  { %2578 = vmatpush3.bf16.msra.mxu1 %v2908_v6  ;;  %2424 = vmatprep.mubr.msk.f32.mxu1 %vm2823_vm2, %v2824_v10 }
 0xe4c   :  { %2579 = vmatprep.subr.bf16.mxu1 %v2822_v8 }
 0xe4f   :  { %2581 = vmatpush3.bf16.msra.mxu1 %v2912_v9 }
 0xe50   :  { %2590 = vmatprep.subr.bf16.mxu1 %v2822_v8 }
 0xf1d   :  { %v891_v25 = vpop.f32.mrb[6].mxu1 }
 0xf1e   :  { %v905_v27 = vadd.f32 %v891_v25, %v2939_v26  ;;  %v2404_v28 = vpop.f32.mrb[7].mxu1  ;;  %v896_v30 = vrot.slane %v891_v25, 6 }
 0xf20   :  { %v907_v29 = vrot.slane %v905_v27, 6  ;;  %v898_v31 = vadd.f32 %v896_v30, %v2955_v34 }
 0xf22   :  { %908 = vrot.lane.b32.xlu0 %v907_v29, %s2825_s15  ;;  %v2200_v6 = vmul.f32 -1.442695, %v898_v31  ;;  %v1162_v31 = vld [vmem:[#allocation6 + $0x28] sm:$0xff] }
 0xf24   :  { %2680 = vpow2.f32 %v2200_v6  ;;  %v1163_v6 = vld [vmem:[#allocation6 + $0x30] sm:$0xff] }
 0xf2e   :  { %v2681_v32 = vpop.eup %2680 }
 0xf2f   :  { %v902_v33 = vadd.f32 1.0, %v2681_v32  ;;  %v1164_v32 = vld [vmem:[#allocation6 + $0x38] sm:$0xff] }
 0xf31   :  { %2682 = vrcp.f32 %v902_v33  ;;  %v3082_v33 = vpack.c.bf16 %v1164_v32, %v1163_v6 }
 0xf3b   :  { %v2683_v35 = vpop.eup %2682 }
 0xf3c   :  { %v918_v43 = vsub.f32 1.0, %v2683_v35  ;;  %v926_v46 = vmul.f32 %v2683_v35, %v924_v42 }
 0xf94   :  { %v909_v37 = vpop.permute.xlu0 %908 }
 0xf95   :  { %v911_v9 = vmul.f32 %v2683_v35, %v909_v37  ;;  %v3091_v35 = vld [vmem:[%s3273_s1 + $0x2] sm:$0x3]  ;;  %v1171_v37 = vld [vmem:[#allocation3 + $0x28] sm:$0xff] }
 0xf97   :  { %913 = vrot.lane.b32.xlu1 %v911_v9, %s2825_s15 }
0x1009   :  { %v914_v38 = vpop.permute.xlu1 %913 }
0x100a   :  { %v916_v39 = vadd.f32 %v914_v38, %v2955_v34  ;;  %v1172_v38 = vld [vmem:[#allocation3 + $0x30] sm:$0xff] }
0x100c   :  { %2684 = vtanh.f32 %v916_v39  ;;  %v1173_v39 = vld [vmem:[#allocation3 + $0x38] sm:$0xff] }
0x1016   :  { %v2685_v41 = vpop.eup %2684 }
0x1017   :  { %920 = vrot.lane.b32.xlu0 %v2685_v41, %s2827_s20  ;;  %v2586_v41 = vpack.c.bf16 %v1173_v39, %v1172_v38 }
0x1089   :  { %v921_v44 = vpop.permute.xlu0 %920 }
0x108a   :  { %v923_v45 = vmul.f32 %v921_v44, %v918_v43 }
0x108c   :  { %v3045_v47 = vadd.f32 %v926_v46, %v923_v45  ;;  %v2213_v45 = vld [vmem:[%s3279_s7 + $0x1] ss:$0 sm:$0xff] }
0x108e   :  { %v933_v48 = vrot.slane %v3045_v47, 2  ;;  %v1037_v2 = vrot.slane %v3045_v47, 6 }
0x1090   :  { %934 = vrot.lane.b32.xlu1 %v933_v48, %s2827_s20 }
0x1102   :  { %v935_v49 = vpop.permute.xlu1 %934 }
0x1103   :  { %2414 = vmatmul.mubr.msk.f32.vlgmr.msra.gmra.mrb[8].mxu0 %vm156_vm3, %v935_v49 }
0x11d6   :  { %v1004_v50 = vpop.f32.mrb[8].mxu0 }
0x11d7   :  { %v1018_v51 = vadd.f32 %v1004_v50, %v2939_v26  ;;  %v2415_v52 = vpop.f32.mrb[9].mxu0  ;;  %v1009_v54 = vrot.slane %v1004_v50, 4 }
0x11d9   :  { %v1020_v53 = vrot.slane %v1018_v51, 4  ;;  %v1011_v55 = vadd.f32 %v1009_v54, %v2955_v34 }
0x11db   :  { %1021 = vrot.lane.b32.xlu0 %v1020_v53, %s2825_s15  ;;  %v2202_v56 = vmul.f32 -1.442695, %v1011_v55 }
0x11dd   :  { %2686 = vpow2.f32 %v2202_v56 }
0x11e7   :  { %v2687_v57 = vpop.eup %2686 }
0x11e8   :  { %v1015_v58 = vadd.f32 1.0, %v2687_v57 }
0x11ea   :  { %2688 = vrcp.f32 %v1015_v58  ;;  %v2207_v58 = vld [vmem:[%s3278_s6 + $0x1] ss:$0 sm:$0xff]  ;;  %s2828_s6 = smov [#allocation8]  }
0x11eb   :  { %s2168_s25 = sshll.u32 %s2828_s6, 4  ;;  %s2169_s25 = int_to_ptr.vmem [resolvable:$true] %s2168_s25 }
0x11ec   :  { %s2790_s26 = scalar_lea.vmem %s2169_s25, 64  ;;  %p2795_p3 = scmp.lt.s32.totalorder %s2169_s25, %s2169_s25 }
0x11ed   :  { %p2791_p2 = scmp.ne.s32.totalorder %s2169_s25, %s2790_s26  ;;  %p2796_p4 = scmp.lt.s32.totalorder %s2790_s26, %s2790_s26 }
0x11ef   :  { %p2797_p5 = por %p2796_p4, %p2795_p3 }
0x11f1   :  { %p2798_p6 = pnand %p2797_p5, %p2791_p2 }
0x11f4   :  { %v2689_v59 = vpop.eup %2688 }
0x11f5   :  { %v1031_v36 = vsub.f32 1.0, %v2689_v59  ;;  %v1039_v4 = vmul.f32 %v2689_v59, %v1037_v2 }
0x124d   :  { %v1022_v60 = vpop.permute.xlu0 %1021 }
0x124e   :  { %v1024_v61 = vmul.f32 %v2689_v59, %v1022_v60 }
0x1250   :  { %1026 = vrot.lane.b32.xlu1 %v1024_v61, %s2825_s15 }
0x12c2   :  { %v1027_v62 = vpop.permute.xlu1 %1026 }
0x12c3   :  { %v1029_v0 = vadd.f32 %v1027_v62, %v2955_v34 }
0x12c5   :  { %2690 = vtanh.f32 %v1029_v0 }
0x12cf   :  { %v2691_v1 = vpop.eup %2690 }
0x12d0   :  { %1033 = vrot.lane.b32.xlu0 %v2691_v1, %s2827_s20 }
0x1342   :  { %v1034_v3 = vpop.permute.xlu0 %1033 }
0x1343   :  { %v1036_v5 = vmul.f32 %v1034_v3, %v1031_v36 }
0x1345   :  { %v3057_v7 = vadd.f32 %v1039_v4, %v1036_v5 }
0x1347   :  { %v1046_v11 = vrot.slane %v3057_v7, 4  ;;  %v1150_v43 = vrot.slane %v3057_v7, 6 }
0x1349   :  { %1047 = vrot.lane.b32.xlu1 %v1046_v11, %s2827_s20 }
0x13bb   :  { %v1048_v12 = vpop.permute.xlu1 %1047 }
0x13bc   :  { %2425 = vmatmul.mubr.msk.f32.vlgmr.msra.gmra.mrb[8].mxu1 %vm156_vm3, %v1048_v12 }
0x13bd   :  { %2446 = vmatprep.mubr.msk.f32.mxu1 %vm2823_vm2, %v2824_v10 }
0x148f   :  { %v1117_v13 = vpop.f32.mrb[8].mxu1 }
0x1490   :  { %v1131_v15 = vadd.f32 %v1117_v13, %v2939_v26  ;;  %v2426_v16 = vpop.f32.mrb[9].mxu1  ;;  %v1122_v18 = vrot.slane %v1117_v13, 2 }
0x1492   :  { %v1133_v17 = vrot.slane %v1131_v15, 2  ;;  %v1124_v19 = vadd.f32 %v1122_v18, %v2955_v34 }
0x1494   :  { %1134 = vrot.lane.b32.xlu0 %v1133_v17, %s2825_s15  ;;  %v2204_v20 = vmul.f32 -1.442695, %v1124_v19 }
0x1496   :  { %2692 = vpow2.f32 %v2204_v20 }
0x14a0   :  { %v2693_v21 = vpop.eup %2692 }
0x14a1   :  { %v1128_v22 = vadd.f32 1.0, %v2693_v21 }
0x14a3   :  { %2694 = vrcp.f32 %v1128_v22 }
0x14ad   :  { %v2695_v23 = vpop.eup %2694 }
0x14ae   :  { %v1144_v42 = vsub.f32 1.0, %v2695_v23  ;;  %v1152_v46 = vmul.f32 %v2695_v23, %v1150_v43 }
0x1506   :  { %v1135_v24 = vpop.permute.xlu0 %1134 }
0x1507   :  { %v1137_v25 = vmul.f32 %v2695_v23, %v1135_v24 }
0x1509   :  { %1139 = vrot.lane.b32.xlu1 %v1137_v25, %s2825_s15 }
0x150d   :  { %482 = vrot.lane.b32.xlu1 %v2978_v14, %s2827_s20 }
0x1511   :  { %710 = vrot.lane.b32.xlu1 %v3014_v63, %s2827_s20  ;;  %v1161_v63 = vld [vmem:[#allocation6 + $0x20] sm:$0xff] }
0x1515   :  { %1042 = vrot.lane.b32.xlu1 %v3057_v7, %s2827_s20 }
0x1519   :  { %1350 = vrot.lane.b32.xlu1 %v2213_v45, %s2825_s15 }
0x157b   :  { %v1140_v26 = vpop.permute.xlu1 %1139 }
0x157c   :  { %v1142_v27 = vadd.f32 %v1140_v26, %v2955_v34  ;;  %v3079_v34 = vpack.c.bf16 %v1162_v31, %v1161_v63 }
0x157e   :  { %2696 = vtanh.f32 %v1142_v27  ;;  %2592 = vmatpush3.bf16.msra.mxu1 %v3079_v34 }
0x157f   :  { %v483_v28 = vpop.permute.xlu1 %482  ;;  %2593 = vmatprep.subr.bf16.mxu1 %v2822_v8 }
0x1580   :  { %486 = vst.msk [vmem:[#allocation2] sm:$0xc] %vm485_vm5, %v483_v28 }
0x1582   :  { %2595 = vmatpush3.bf16.msra.mxu1 %v3082_v33 }
0x1583   :  { %v711_v29 = vpop.permute.xlu1 %710  ;;  %2602 = vmatprep.subr.bf16.mxu1 %v2822_v8 }
0x1584   :  { %714 = vst.msk [vmem:[#allocation2] sm:$0xc0] %vm713_vm6, %v711_v29 }
0x1585   :  { %2447 = vmatmul.mubr.msk.f32.vlgmr.msra.gmra.mrb[10].mxu1 %vm156_vm3, %v3091_v35 }
0x1586   :  { %2604 = vmatpush3.bf16.msra.mxu1 %v3079_v34  ;;  %2468 = vmatprep.mubr.msk.f32.mxu1 %vm2823_vm2, %v2824_v10 }
0x1587   :  { %v1043_v14 = vpop.permute.xlu1 %1042  ;;  %2605 = vmatprep.subr.bf16.mxu1 %v2822_v8 }
0x1588   :  { %v2697_v30 = vpop.eup %2696  ;;  %1045 = vst.msk [vmem:[#allocation2 + $0x8] sm:$0x30] %vm599_vm7, %v1043_v14 }
0x1589   :  { %1146 = vrot.lane.b32.xlu0 %v2697_v30, %s2827_s20 }
0x158a   :  { %2607 = vmatpush3.bf16.msra.mxu1 %v3082_v33 }
0x158b   :  { %2614 = vmatprep.subr.bf16.mxu1 %v2822_v8  ;;  %v3114_v54 = vpop.permute.xlu1 %1350 }
0x158d   :  { %596 = vrot.lane.b32.xlu0 %v2996_v40, %s2827_s20  ;;  %v1170_v40 = vld [vmem:[#allocation3 + $0x20] sm:$0xff] }
0x158e   :  { %v2582_v9 = vpack.c.bf16 %v1171_v37, %v1170_v40 }
0x1590   :  { %2583 = vmatprep.subr.bf16.mxu0 %v2582_v9 }
0x1591   :  { %929 = vrot.lane.b32.xlu0 %v3045_v47, %s2827_s20  ;;  %2585 = vmatpush3.bf16.msra.mxu0 %v2582_v9 }
0x1592   :  { %2587 = vmatprep.subr.bf16.mxu0 %v2586_v41 }
0x1595   :  { %2589 = vmatpush3.bf16.msra.mxu0 %v2586_v41 }
0x1596   :  { %2596 = vmatprep.subr.bf16.mxu0 %v2822_v8 }
0x15fb   :  { %v1147_v44 = vpop.permute.xlu0 %1146 }
0x15fc   :  { %v1149_v47 = vmul.f32 %v1147_v44, %v1144_v42 }
0x15fe   :  { %v1153_v48 = vadd.f32 %v1152_v46, %v1149_v47 }
0x15ff   :  { %v597_v49 = vpop.permute.xlu0 %596 }
0x1600   :  { %600 = vst.msk [vmem:[#allocation2] sm:$0x30] %vm599_vm7, %v597_v49  ;;  %1155 = vrot.lane.b32.xlu0 %v1153_v48, %s2827_s20 }
0x1603   :  { %v930_v50 = vpop.permute.xlu0 %929 }
0x1604   :  { %932 = vst.msk [vmem:[#allocation2 + $0x8] sm:$0xc] %vm485_vm5, %v930_v50 }
0x1607   :  { %v1167_v51 = vld [vmem:[#allocation2] sm:$0xff] }
0x1608   :  { %2435 = vmatprep.mubr.msk.f32.mxu0 %vm156_vm3, %v1167_v51 }
0x1658   :  { %v1334_v52 = vpop.f32.mrb[10].mxu1 }
0x1659   :  { %v2448_v53 = vpop.f32.mrb[11].mxu1  ;;  %v1353_v55 = vadd.f32 %v3114_v54, %v1334_v52 }
0x165b   :  { %1355 = vrot.lane.b32.xlu0 %v1353_v55, %s2825_s15 }
0x1672   :  { %v1156_v56 = vpop.permute.xlu0 %1155 }
0x1673   :  { %1158 = vst.msk [vmem:[#allocation2 + $0x8] sm:$0xc0] %vm713_vm6, %v1156_v56  ;;  %1159 = vst.msk [vmem:[#allocation8 - $0x6] sm:$0xc0] %vm713_vm6, %v1156_v56 }
0x167a   :  { %v1168_v57 = vld [vmem:[#allocation2 + $0x8] sm:$0xff] }
0x167b   :  { %2436 = vmatmul.mubr.msk.f32.vlgmr.msra.gmra.mrb[10].mxu0 %vm156_vm3, %v1168_v57 }
0x167c   :  { %2598 = vmatpush3.bf16.msra.mxu0 %v3079_v34  ;;  %2457 = vmatprep.mubr.msk.f32.mxu0 %vm2823_vm2, %v2824_v10 }
0x167d   :  { %2599 = vmatprep.subr.bf16.mxu0 %v2822_v8 }
0x1680   :  { %2601 = vmatpush3.bf16.msra.mxu0 %v3082_v33 }
0x1681   :  { %2608 = vmatprep.subr.bf16.mxu0 %v2822_v8 }
0x16cd   :  { %v1356_v3 = vpop.permute.xlu0 %1355 }
0x174e   :  { %v2437_v59 = vpop.f32.mrb[10].mxu0 }
0x174f   :  { %v3130_v60 = vadd.f32 %v2437_v59, %v2207_v58  ;;  %v1254_v61 = vpop.f32.mrb[11].mxu0 }
0x1750   :  { %v3132_v62 = vadd.f32 %v2207_v58, %v1254_v61 }
0x1752   :  { %v1338_v0 = vadd.f32 %v1334_v52, %v3132_v62 }
0x1754   :  { %v2212_v1 = vmul.f32 -1.442695, %v1338_v0 }
0x1756   :  { %2698 = vpow2.f32 %v2212_v1 }
0x1760   :  { %v2699_v36 = vpop.eup %2698 }
0x1761   :  { %v1342_v2 = vadd.f32 1.0, %v2699_v36 }
0x1763   :  { %2700 = vrcp.f32 %v1342_v2 }
0x176d   :  { %v2701_v4 = vpop.eup %2700 }
0x176e   :  { %v1358_v5 = vmul.f32 %v2701_v4, %v1356_v3  ;;  %v1365_v15 = vsub.f32 1.0, %v2701_v4 }
0x1770   :  { %1360 = vrot.lane.b32.xlu1 %v1358_v5, %s2825_s15 }
0x1774   :  { %1371 = vrot.lane.b32.xlu1 %v3091_v35, %s2826_s3 }
0x17e2   :  { %v1361_v7 = vpop.permute.xlu1 %1360 }
0x17e3   :  { %v1363_v11 = vadd.f32 %v1361_v7, %v3132_v62 }
0x17e5   :  { %2702 = vtanh.f32 %v1363_v11 }
0x17e6   :  { %v1372_v13 = vpop.permute.xlu1 %1371 }
0x17e7   :  { %v1374_v17 = vmul.f32 %v2701_v4, %v1372_v13 }
0x17ef   :  { %v2703_v12 = vpop.eup %2702 }
0x17f0   :  { %1367 = vrot.lane.b32.xlu0 %v2703_v12, %s2827_s20 }
0x1862   :  { %v1368_v16 = vpop.permute.xlu0 %1367 }
0x1863   :  { %v1370_v18 = vmul.f32 %v1368_v16, %v1365_v15 }
0x1865   :  { %v1375_v19 = vadd.f32 %v1374_v17, %v1370_v18 }
0x1867   :  { %1377 = vrot.lane.b32.xlu0 %v1375_v19, %s2827_s20  ;;  %v1482_v35 = vrot.slane %v1375_v19, 6 }
0x18d9   :  { %v1378_v20 = vpop.permute.xlu0 %1377 }
0x18da   :  { %1380 = vst.msk [vmem:[#allocation2] sm:$0x3] %vm374_vm4, %v1378_v20  ;;  %2458 = vmatmul.mubr.msk.f32.vlgmr.msra.gmra.mrb[12].mxu0 %vm156_vm3, %v1378_v20 }
0x18db   :  { %2610 = vmatpush3.bf16.msra.mxu0 %v3079_v34  ;;  %2479 = vmatprep.mubr.msk.f32.mxu0 %vm2823_vm2, %v2824_v10 }
0x18dc   :  { %2611 = vmatprep.subr.bf16.mxu0 %v2822_v8 }
0x18df   :  { %2613 = vmatpush3.bf16.msra.mxu0 %v3082_v33 }
0x18e0   :  { %2620 = vmatprep.subr.bf16.mxu0 %v2822_v8 }
0x19ad   :  { %v1449_v21 = vpop.f32.mrb[12].mxu0 }
0x19ae   :  { %v1463_v22 = vadd.f32 %v1449_v21, %v3114_v54  ;;  %v2459_v23 = vpop.f32.mrb[13].mxu0  ;;  %v1454_v25 = vrot.slane %v1449_v21, 6 }
0x19b0   :  { %v1465_v24 = vrot.slane %v1463_v22, 6  ;;  %v1456_v26 = vadd.f32 %v1454_v25, %v3132_v62 }
0x19b2   :  { %1466 = vrot.lane.b32.xlu1 %v1465_v24, %s2825_s15  ;;  %v2215_v27 = vmul.f32 -1.442695, %v1456_v26 }
0x19b4   :  { %2704 = vpow2.f32 %v2215_v27 }
0x19be   :  { %v2705_v28 = vpop.eup %2704 }
0x19bf   :  { %v1460_v29 = vadd.f32 1.0, %v2705_v28 }
0x19c1   :  { %2706 = vrcp.f32 %v1460_v29 }
0x19cb   :  { %v2707_v14 = vpop.eup %2706 }
0x19cc   :  { %v1476_v40 = vsub.f32 1.0, %v2707_v14  ;;  %v1484_v38 = vmul.f32 %v2707_v14, %v1482_v35 }
0x1a24   :  { %v1467_v30 = vpop.permute.xlu1 %1466 }
0x1a25   :  { %v1469_v63 = vmul.f32 %v2707_v14, %v1467_v30 }
0x1a27   :  { %1471 = vrot.lane.b32.xlu0 %v1469_v63, %s2825_s15 }
0x1a99   :  { %v1472_v31 = vpop.permute.xlu0 %1471 }
0x1a9a   :  { %v1474_v6 = vadd.f32 %v1472_v31, %v3132_v62 }
0x1a9c   :  { %2708 = vtanh.f32 %v1474_v6 }
0x1aa6   :  { %v2709_v32 = vpop.eup %2708 }
0x1aa7   :  { %1478 = vrot.lane.b32.xlu1 %v2709_v32, %s2827_s20 }
0x1b19   :  { %v1479_v37 = vpop.permute.xlu1 %1478 }
0x1b1a   :  { %v1481_v9 = vmul.f32 %v1479_v37, %v1476_v40 }
0x1b1c   :  { %v3155_v39 = vadd.f32 %v1484_v38, %v1481_v9 }
0x1b1e   :  { %v1491_v41 = vrot.slane %v3155_v39, 2  ;;  %v1595_v61 = vrot.slane %v3155_v39, 6 }
0x1b20   :  { %1492 = vrot.lane.b32.xlu0 %v1491_v41, %s2827_s20 }
0x1b92   :  { %v1493_v42 = vpop.permute.xlu0 %1492 }
0x1b93   :  { %2469 = vmatmul.mubr.msk.f32.vlgmr.msra.gmra.mrb[12].mxu1 %vm156_vm3, %v1493_v42 }
0x1b94   :  { %2616 = vmatpush3.bf16.msra.mxu1 %v3079_v34  ;;  %2490 = vmatprep.mubr.msk.f32.mxu1 %vm2823_vm2, %v2824_v10 }
0x1b95   :  { %2617 = vmatprep.subr.bf16.mxu1 %v2822_v8 }
0x1b98   :  { %2619 = vmatpush3.bf16.msra.mxu1 %v3082_v33 }
0x1b99   :  { %2626 = vmatprep.subr.bf16.mxu1 %v2822_v8 }
0x1c66   :  { %v1562_v43 = vpop.f32.mrb[12].mxu1 }
0x1c67   :  { %v1576_v44 = vadd.f32 %v1562_v43, %v3114_v54  ;;  %v2470_v45 = vpop.f32.mrb[13].mxu1  ;;  %v1567_v47 = vrot.slane %v1562_v43, 4 }
0x1c69   :  { %v1578_v46 = vrot.slane %v1576_v44, 4  ;;  %v1569_v48 = vadd.f32 %v1567_v47, %v3132_v62 }
0x1c6b   :  { %1579 = vrot.lane.b32.xlu1 %v1578_v46, %s2825_s15  ;;  %v2217_v49 = vmul.f32 -1.442695, %v1569_v48 }
0x1c6d   :  { %2710 = vpow2.f32 %v2217_v49 }
0x1c77   :  { %v2711_v50 = vpop.eup %2710 }
0x1c78   :  { %v1573_v51 = vadd.f32 1.0, %v2711_v50 }
0x1c7a   :  { %2712 = vrcp.f32 %v1573_v51 }
0x1c84   :  { %v2713_v52 = vpop.eup %2712 }
0x1c85   :  { %v1589_v59 = vsub.f32 1.0, %v2713_v52  ;;  %v1597_v1 = vmul.f32 %v2713_v52, %v1595_v61 }
0x1cdd   :  { %v1580_v53 = vpop.permute.xlu1 %1579 }
0x1cde   :  { %v1582_v55 = vmul.f32 %v2713_v52, %v1580_v53 }
0x1ce0   :  { %1584 = vrot.lane.b32.xlu0 %v1582_v55, %s2825_s15 }
0x1d52   :  { %v1585_v56 = vpop.permute.xlu0 %1584 }
0x1d53   :  { %v1587_v57 = vadd.f32 %v1585_v56, %v3132_v62 }
0x1d55   :  { %2714 = vtanh.f32 %v1587_v57 }
0x1d5f   :  { %v2715_v58 = vpop.eup %2714 }
0x1d60   :  { %1591 = vrot.lane.b32.xlu1 %v2715_v58, %s2827_s20 }
0x1dd2   :  { %v1592_v0 = vpop.permute.xlu1 %1591 }
0x1dd3   :  { %v1594_v36 = vmul.f32 %v1592_v0, %v1589_v59 }
0x1dd5   :  { %v3173_v2 = vadd.f32 %v1597_v1, %v1594_v36 }
0x1dd7   :  { %v1604_v3 = vrot.slane %v3173_v2, 4  ;;  %v1708_v26 = vrot.slane %v3173_v2, 6 }
0x1dd9   :  { %1605 = vrot.lane.b32.xlu0 %v1604_v3, %s2827_s20 }
0x1e4b   :  { %v1606_v4 = vpop.permute.xlu0 %1605 }
0x1e4c   :  { %2480 = vmatmul.mubr.msk.f32.vlgmr.msra.gmra.mrb[14].mxu0 %vm156_vm3, %v1606_v4 }
0x1e4d   :  { %2622 = vmatpush3.bf16.msra.mxu0 %v3079_v34  ;;  %2501 = vmatprep.mubr.msk.f32.mxu0 %vm2823_vm2, %v2824_v10 }
0x1e4e   :  { %2623 = vmatprep.subr.bf16.mxu0 %v2822_v8 }
0x1e51   :  { %2625 = vmatpush3.bf16.msra.mxu0 %v3082_v33 }
0x1e52   :  { %2632 = vmatprep.subr.bf16.mxu0 %v2822_v8 }
0x1f1f   :  { %v1675_v5 = vpop.f32.mrb[14].mxu0 }
0x1f20   :  { %v1689_v7 = vadd.f32 %v1675_v5, %v3114_v54  ;;  %v2481_v11 = vpop.f32.mrb[15].mxu0  ;;  %v1680_v13 = vrot.slane %v1675_v5, 2 }
0x1f22   :  { %v1691_v12 = vrot.slane %v1689_v7, 2  ;;  %v1682_v15 = vadd.f32 %v1680_v13, %v3132_v62 }
0x1f24   :  { %1692 = vrot.lane.b32.xlu1 %v1691_v12, %s2825_s15  ;;  %v2219_v16 = vmul.f32 -1.442695, %v1682_v15 }
0x1f26   :  { %2716 = vpow2.f32 %v2219_v16 }
0x1f30   :  { %v2717_v17 = vpop.eup %2716 }
0x1f31   :  { %v1686_v18 = vadd.f32 1.0, %v2717_v17 }
0x1f33   :  { %2718 = vrcp.f32 %v1686_v18 }
0x1f3d   :  { %v2719_v19 = vpop.eup %2718 }
0x1f3e   :  { %v1702_v25 = vsub.f32 1.0, %v2719_v19  ;;  %v1710_v28 = vmul.f32 %v2719_v19, %v1708_v26 }
0x1f96   :  { %v1693_v20 = vpop.permute.xlu1 %1692 }
0x1f97   :  { %v1695_v21 = vmul.f32 %v2719_v19, %v1693_v20 }
0x1f99   :  { %1697 = vrot.lane.b32.xlu0 %v1695_v21, %s2825_s15 }
0x200b   :  { %v1698_v22 = vpop.permute.xlu0 %1697 }
0x200c   :  { %v1700_v23 = vadd.f32 %v1698_v22, %v3132_v62 }
0x200e   :  { %2720 = vtanh.f32 %v1700_v23 }
0x2018   :  { %v2721_v24 = vpop.eup %2720 }
0x2019   :  { %1704 = vrot.lane.b32.xlu1 %v2721_v24, %s2827_s20 }
0x208b   :  { %v1705_v27 = vpop.permute.xlu1 %1704 }
0x208c   :  { %v1707_v29 = vmul.f32 %v1705_v27, %v1702_v25 }
0x208e   :  { %v3191_v14 = vadd.f32 %v1710_v28, %v1707_v29 }
0x2090   :  { %v1717_v30 = vrot.slane %v3191_v14, 6 }
0x2092   :  { %1718 = vrot.lane.b32.xlu0 %v1717_v30, %s2827_s20 }
0x2104   :  { %v1719_v63 = vpop.permute.xlu0 %1718 }
0x2105   :  { %2491 = vmatmul.mubr.msk.f32.vlgmr.msra.gmra.mrb[14].mxu1 %vm156_vm3, %v1719_v63 }
0x2106   :  { %2628 = vmatpush3.bf16.msra.mxu1 %v3079_v34  ;;  %2512 = vmatprep.mubr.msk.f32.mxu1 %vm2823_vm2, %v2824_v10 }
0x2107   :  { %2629 = vmatprep.subr.bf16.mxu1 %v2822_v8 }
0x210a   :  { %2631 = vmatpush3.bf16.msra.mxu1 %v3082_v33 }
0x21d8   :  { %v1788_v62 = vpop.f32.mrb[14].mxu1 }
0x21d9   :  { %v1799_v31 = vadd.f32 %v1788_v62, %v3114_v54  ;;  %v2492_v6 = vpop.f32.mrb[15].mxu1  ;;  %v1792_v32 = vadd.f32 %v1788_v62, %v3130_v60 }
0x21db   :  { %1801 = vrot.lane.b32.xlu1 %v1799_v31, %s2825_s15  ;;  %v2221_v35 = vmul.f32 -1.442695, %v1792_v32 }
0x21dd   :  { %2722 = vpow2.f32 %v2221_v35 }
0x21e7   :  { %v2723_v40 = vpop.eup %2722 }
0x21e8   :  { %v1796_v37 = vadd.f32 1.0, %v2723_v40 }
0x21ea   :  { %2724 = vrcp.f32 %v1796_v37 }
0x21f4   :  { %v2725_v9 = vpop.eup %2724 }
0x21f5   :  { %v1811_v45 = vsub.f32 1.0, %v2725_v9  ;;  %v1818_v47 = vmul.f32 %v2725_v9, %v1717_v30 }
0x224d   :  { %v1802_v38 = vpop.permute.xlu1 %1801 }
0x224e   :  { %v1804_v41 = vmul.f32 %v2725_v9, %v1802_v38 }
0x2250   :  { %1806 = vrot.lane.b32.xlu0 %v1804_v41, %s2825_s15 }
0x22c2   :  { %v1807_v42 = vpop.permute.xlu0 %1806 }
0x22c3   :  { %v1809_v43 = vadd.f32 %v1807_v42, %v3130_v60 }
0x22c5   :  { %2726 = vtanh.f32 %v1809_v43 }
0x22cf   :  { %v2727_v44 = vpop.eup %2726 }
0x22d0   :  { %1813 = vrot.lane.b32.xlu1 %v2727_v44, %s2827_s20 }
0x2342   :  { %v1814_v46 = vpop.permute.xlu1 %1813 }
0x2343   :  { %v1816_v48 = vmul.f32 %v1814_v46, %v1811_v45 }
0x2345   :  { %v1819_v49 = vadd.f32 %v1818_v47, %v1816_v48 }
0x2347   :  { %1821 = vrot.lane.b32.xlu0 %v1819_v49, %s2827_s20  ;;  %v1926_v36 = vrot.slane %v1819_v49, 6 }
0x23b9   :  { %v1822_v50 = vpop.permute.xlu0 %1821 }
0x23ba   :  { %1824 = vst.msk [vmem:[#allocation2 + $0x8] sm:$0x3] %vm374_vm4, %v1822_v50  ;;  %2502 = vmatmul.mubr.msk.f32.vlgmr.msra.gmra.mrb[16].mxu0 %vm156_vm3, %v1822_v50 }
0x23bb   :  { %2634 = vmatpush3.bf16.msra.mxu0 %v3079_v34  ;;  %2523 = vmatprep.mubr.msk.f32.mxu0 %vm2823_vm2, %v2824_v10 }
0x23bc   :  { %2635 = vmatprep.subr.bf16.mxu0 %v2822_v8 }
0x23bf   :  { %2637 = vmatpush3.bf16.msra.mxu0 %v3082_v33 }
0x248d   :  { %v1893_v51 = vpop.f32.mrb[16].mxu0 }
0x248e   :  { %v1907_v52 = vadd.f32 %v1893_v51, %v3114_v54  ;;  %v2503_v53 = vpop.f32.mrb[17].mxu0  ;;  %v1898_v56 = vrot.slane %v1893_v51, 6 }
0x2490   :  { %v1909_v55 = vrot.slane %v1907_v52, 6  ;;  %v1900_v57 = vadd.f32 %v1898_v56, %v3130_v60 }
0x2492   :  { %1910 = vrot.lane.b32.xlu1 %v1909_v55, %s2825_s15  ;;  %v2223_v58 = vmul.f32 -1.442695, %v1900_v57 }
0x2494   :  { %2728 = vpow2.f32 %v2223_v58 }
0x249e   :  { %v2729_v34 = vpop.eup %2728 }
0x249f   :  { %v1904_v59 = vadd.f32 1.0, %v2729_v34 }
0x24a1   :  { %2730 = vrcp.f32 %v1904_v59 }
0x24ab   :  { %v2731_v10 = vpop.eup %2730 }
0x24ac   :  { %v1920_v3 = vsub.f32 1.0, %v2731_v10  ;;  %v1928_v7 = vmul.f32 %v2731_v10, %v1926_v36 }
0x2504   :  { %v1911_v61 = vpop.permute.xlu1 %1910 }
0x2505   :  { %v1913_v8 = vmul.f32 %v2731_v10, %v1911_v61 }
0x2507   :  { %1915 = vrot.lane.b32.xlu0 %v1913_v8, %s2825_s15 }
0x2579   :  { %v1916_v33 = vpop.permute.xlu0 %1915 }
0x257a   :  { %v1918_v0 = vadd.f32 %v1916_v33, %v3130_v60 }
0x257c   :  { %2732 = vtanh.f32 %v1918_v0 }
0x2586   :  { %v2733_v1 = vpop.eup %2732 }
0x2587   :  { %1922 = vrot.lane.b32.xlu1 %v2733_v1, %s2827_s20 }
0x25f9   :  { %v1923_v4 = vpop.permute.xlu1 %1922 }
0x25fa   :  { %v1925_v5 = vmul.f32 %v1923_v4, %v1920_v3 }
0x25fc   :  { %v3221_v11 = vadd.f32 %v1928_v7, %v1925_v5 }
0x25fe   :  { %v1935_v12 = vrot.slane %v3221_v11, 2  ;;  %v2039_v63 = vrot.slane %v3221_v11, 6 }
0x2600   :  { %1936 = vrot.lane.b32.xlu0 %v1935_v12, %s2827_s20 }
0x2672   :  { %v1937_v13 = vpop.permute.xlu0 %1936 }
0x2673   :  { %2513 = vmatmul.mubr.msk.f32.vlgmr.msra.gmra.mrb[16].mxu1 %vm156_vm3, %v1937_v13 }
0x2746   :  { %v2006_v15 = vpop.f32.mrb[16].mxu1 }
0x2747   :  { %v2020_v16 = vadd.f32 %v2006_v15, %v3114_v54  ;;  %v2514_v17 = vpop.f32.mrb[17].mxu1  ;;  %v2011_v19 = vrot.slane %v2006_v15, 4 }
0x2749   :  { %v2022_v18 = vrot.slane %v2020_v16, 4  ;;  %v2013_v20 = vadd.f32 %v2011_v19, %v3130_v60 }
0x274b   :  { %2023 = vrot.lane.b32.xlu1 %v2022_v18, %s2825_s15  ;;  %v2225_v21 = vmul.f32 -1.442695, %v2013_v20 }
0x274d   :  { %2734 = vpow2.f32 %v2225_v21 }
0x2757   :  { %v2735_v22 = vpop.eup %2734 }
0x2758   :  { %v2017_v23 = vadd.f32 1.0, %v2735_v22 }
0x275a   :  { %2736 = vrcp.f32 %v2017_v23 }
0x2764   :  { %v2737_v24 = vpop.eup %2736 }
0x2765   :  { %v2033_v30 = vsub.f32 1.0, %v2737_v24  ;;  %v2041_v31 = vmul.f32 %v2737_v24, %v2039_v63 }
0x27bd   :  { %v2024_v25 = vpop.permute.xlu1 %2023 }
0x27be   :  { %v2026_v26 = vmul.f32 %v2737_v24, %v2024_v25 }
0x27c0   :  { %2028 = vrot.lane.b32.xlu0 %v2026_v26, %s2825_s15 }
0x2832   :  { %v2029_v27 = vpop.permute.xlu0 %2028 }
0x2833   :  { %v2031_v28 = vadd.f32 %v2029_v27, %v3130_v60 }
0x2835   :  { %2738 = vtanh.f32 %v2031_v28 }
0x283f   :  { %v2739_v29 = vpop.eup %2738 }
0x2840   :  { %2035 = vrot.lane.b32.xlu1 %v2739_v29, %s2827_s20 }
0x28b2   :  { %v2036_v62 = vpop.permute.xlu1 %2035 }
0x28b3   :  { %v2038_v6 = vmul.f32 %v2036_v62, %v2033_v30 }
0x28b5   :  { %v2042_v32 = vadd.f32 %v2041_v31, %v2038_v6 }
0x28b7   :  { %v2048_v35 = vrot.slane %v2042_v32, 4 }
0x28b9   :  { %2049 = vrot.lane.b32.xlu0 %v2048_v35, %s2827_s20 }
0x292b   :  { %v2050_v40 = vpop.permute.xlu0 %2049 }
0x292c   :  { %2524 = vmatmul.mubr.msk.f32.vlgmr.msra.gmra.mrb[18].mxu0 %vm156_vm3, %v2050_v40 }
0x29ff   :  { %v2119_v37 = vpop.f32.mrb[18].mxu0 }
0x2a00   :  { %v2133_v9 = vadd.f32 %v2119_v37, %v3114_v54  ;;  %v2525_v38 = vpop.f32.mrb[19].mxu0  ;;  %v2124_v42 = vrot.slane %v2119_v37, 2 }
0x2a02   :  { %v2135_v41 = vrot.slane %v2133_v9, 2  ;;  %v2126_v43 = vadd.f32 %v2124_v42, %v3130_v60 }
0x2a04   :  { %2136 = vrot.lane.b32.xlu1 %v2135_v41, %s2825_s15  ;;  %v2227_v44 = vmul.f32 -1.442695, %v2126_v43 }
0x2a06   :  { %2740 = vpow2.f32 %v2227_v44 }
0x2a10   :  { %v2741_v45 = vpop.eup %2740 }
0x2a11   :  { %v2130_v46 = vadd.f32 1.0, %v2741_v45 }
0x2a13   :  { %2742 = vrcp.f32 %v2130_v46 }
0x2a1d   :  { %v2743_v47 = vpop.eup %2742 }
0x2a1e   :  { %v2146_v53 = vsub.f32 1.0, %v2743_v47 }
0x2a76   :  { %v2137_v48 = vpop.permute.xlu1 %2136 }
0x2a77   :  { %v2139_v49 = vmul.f32 %v2743_v47, %v2137_v48 }
0x2a79   :  { %2141 = vrot.lane.b32.xlu0 %v2139_v49, %s2825_s15 }
0x2a7d   :  { %1600 = vrot.lane.b32.xlu0 %v3173_v2, %s2827_s20  ;;  %v2152_v2 = vrot.slane %v2042_v32, 6 }
0x2a7f   :  { %v2154_v56 = vmul.f32 %v2743_v47, %v2152_v2 }
0x2aeb   :  { %v2142_v54 = vpop.permute.xlu0 %2141 }
0x2aec   :  { %v2144_v50 = vadd.f32 %v2142_v54, %v3130_v60 }
0x2aee   :  { %2744 = vtanh.f32 %v2144_v50 }
0x2aef   :  { %v1601_v51 = vpop.permute.xlu0 %1600 }
0x2af0   :  { %1603 = vst.msk [vmem:[#allocation2] sm:$0x30] %vm599_vm7, %v1601_v51 }
0x2af8   :  { %v2745_v52 = vpop.eup %2744 }
0x2af9   :  { %2148 = vrot.lane.b32.xlu1 %v2745_v52, %s2827_s20 }
0x2afd   :  { %1487 = vrot.lane.b32.xlu1 %v3155_v39, %s2827_s20 }
0x2b01   :  { %1713 = vrot.lane.b32.xlu1 %v3191_v14, %s2827_s20 }
0x2b05   :  { %2044 = vrot.lane.b32.xlu1 %v2042_v32, %s2827_s20 }
0x2b6b   :  { %v2149_v55 = vpop.permute.xlu1 %2148 }
0x2b6c   :  { %v2151_v60 = vmul.f32 %v2149_v55, %v2146_v53 }
0x2b6e   :  { %v2155_v57 = vadd.f32 %v2154_v56, %v2151_v60 }
0x2b6f   :  { %v1488_v58 = vpop.permute.xlu1 %1487 }
0x2b70   :  { %1490 = vst.msk [vmem:[#allocation2] sm:$0xc] %vm485_vm5, %v1488_v58  ;;  %2157 = vrot.lane.b32.xlu0 %v2155_v57, %s2827_s20 }
0x2b73   :  { %v1714_v34 = vpop.permute.xlu1 %1713 }
0x2b74   :  { %1716 = vst.msk [vmem:[#allocation2] sm:$0xc0] %vm713_vm6, %v1714_v34  ;;  %1931 = vrot.lane.b32.xlu0 %v3221_v11, %s2827_s20 }
0x2b77   :  { %v2045_v39 = vpop.permute.xlu1 %2044 }
0x2b78   :  { %2047 = vst.msk [vmem:[#allocation2 + $0x8] sm:$0x30] %vm599_vm7, %v2045_v39 }
0x2be2   :  { %v2158_v14 = vpop.permute.xlu0 %2157 }
0x2be3   :  { %2160 = vst.msk [vmem:[#allocation2 + $0x8] sm:$0xc0] %vm713_vm6, %v2158_v14  ;;  %2162 = vst.msk [vmem:[#allocation8 - $0x4] sm:$0xc0] %vm713_vm6, %v2158_v14 }
0x2be4   :  { %2801 = shalt.err (!%p2798_p6)
}
0x2be5   :  { %s2802_s4 = scalar_lea.hbm %s3280_s8, 64 }
0x2be6   :  { %p2803_p7 = scmp.ne.s32.totalorder %s3280_s8, %s2802_s4  ;;  %p2806_p8 = scmp.lt.u32.totalorder %s2802_s4, %s3280_s8 }
0x2be8   :  { %p2808_p9 = pnand %p2806_p8, %p2803_p7 }
0x2bea   :  { %2811 = shalt.err (!%p2808_p9)
}
0x2beb   :  { %s2829_s11 = smov 2   ;;  %v1932_v59 = vpop.permute.xlu0 %1931 }
0x2bec   :  { %2174 = dma.vmem_to_hbm [thread:$0]  %s2169_s25, 64, %s3280_s8, [#allocation5], %s2826_s3, %s2826_s3, %s2829_s11   ;;  %1934 = vst.msk [vmem:[#allocation2 + $0x8] sm:$0xc] %vm485_vm5, %v1932_v59 }
0x2bed   :  { %2816 = dma.done.wait [#allocation5], 64  }
0x2bee   :  { %2817 = vsyncadd [#allocation5], 4294967232 }
0x2bef   :  { %2178 = vsyncpa [#allocation4], 1 }
0x2bf0   :  { %2179 = vsyncpa [#allocation7], 1 }
0x2bf1   :  { %2180 = vsyncpa [#allocation5], 1 }

</bundles_post_ra>
